<compile_context>
chip_gen: v7x
topology: tpu7x:2x2x1
jax: 0.10.0
libtpu: 0.0.40
codegen_flags: <defaults>
</compile_context>

<pallas_src>
import functools

import jax
import jax.numpy as jnp
from jax.experimental import pallas as pl
from jax.experimental.pallas import tpu as pltpu


def _round_up(a, m):
    return ((a + m - 1) // m) * m


def _opinion_kernel(nr_agents, nr_budgets, fused_store,
                    x_ref, bidx_ref,
                    w1_ref, b1_ref, w2_ref, b2_ref, emb_ref,
                    w3h_ref, b3h_ref,
                    out_ref):
    N = nr_agents
    TB = x_ref.shape[0]
    OUT_W = out_ref.shape[1]

    x = x_ref[...]                                     # (TB, N) bf16

    # fc: lin1 -> relu -> lin2 -> relu   (bf16 MXU passes, f32 accumulation)
    h1 = jnp.dot(x, w1_ref[...], preferred_element_type=jnp.float32) + b1_ref[...]
    h1 = jnp.maximum(h1, 0.0)
    h2 = jnp.dot(h1.astype(w2_ref.dtype), w2_ref[...],
                 preferred_element_type=jnp.float32) + b2_ref[...]
    h2 = jnp.maximum(h2, 0.0)

    # Embedding lookup: unrolled VPU select chain for tiny tables; one-hot
    # MXU matmul once the chain would start to saturate the VALU.
    bidx = bidx_ref[...]                               # (TB, 1) int32
    if nr_budgets <= 8:
        beta_feat = jnp.broadcast_to(emb_ref[0:1, :], h2.shape)
        for k in range(1, nr_budgets):
            beta_feat = jnp.where(bidx == k, emb_ref[k:k + 1, :], beta_feat)
    else:
        lanes = jax.lax.broadcasted_iota(jnp.int32, (TB, nr_budgets), 1)
        onehot = (bidx == lanes).astype(jnp.float32)
        beta_feat = jnp.dot(onehot, emb_ref[...],
                            preferred_element_type=jnp.float32)

    combined = h2 + beta_feat                          # (TB, hidden) f32

    # Fused prediction head: ONE MXU push producing [A | b | q | pad] lanes.
    head = jnp.dot(combined.astype(w3h_ref.dtype), w3h_ref[...],
                   preferred_element_type=jnp.float32) + b3h_ref[...]
    z = head[:, 0:N]                                   # A logits
    b_vec = head[:, N:2 * N]                           # b
    q_vals = head[:, 2 * N:2 * N + 1]                  # q

    A_diag = jnp.exp(z)                                # EUP
    A_inv = jnp.exp(-z)                                # EUP (cheaper than 1/A)
    w_star = -A_inv * b_vec
    # q + 0.5*sum(w*^2 * A) + sum(b * w*)  ==  q - 0.5*sum(b^2 / A)
    q_full = q_vals - 0.5 * jnp.sum(b_vec * b_vec * A_inv,
                                    axis=1, keepdims=True)

    pad = OUT_W - (3 * N + 1)
    if fused_store:
        # One in-register slab, one full-width unmasked store per vreg row.
        pieces = [w_star, A_diag, b_vec, q_full]
        if pad > 0:
            pieces.append(jnp.zeros((TB, pad), jnp.float32))
        out_ref[...] = jnp.concatenate(pieces, axis=1).astype(out_ref.dtype)
    else:
        # Fallback path: masked sub-slice stores (always lowers).
        out_ref[:, 0:N] = w_star.astype(out_ref.dtype)
        out_ref[:, N:2 * N] = A_diag.astype(out_ref.dtype)
        out_ref[:, 2 * N:3 * N] = b_vec.astype(out_ref.dtype)
        out_ref[:, 3 * N:3 * N + 1] = q_full.astype(out_ref.dtype)
        if pad > 0:
            out_ref[:, 3 * N + 1:] = jnp.zeros((TB, pad), out_ref.dtype)


def opinion_net_forward(x, beta_idx, params, *, nr_agents, nr_budgets, hidden,
                        block_b=None, out_dtype=jnp.float32):
    """Returns (w_star, q_val_full, A_diag, b) matching the PyTorch module."""
    B = x.shape[0]
    N = nr_agents
    w1, b1, w2, b2, emb, w3, b3 = params

    # ---- Head fusion: reorder columns to [A | b | q], pad to lane width. ----
    HEAD_W = _round_up(2 * N + 1, 128)
    w3_head = jnp.concatenate(
        [w3[:, 1:N + 1], w3[:, N + 1:2 * N + 1], w3[:, 0:1]], axis=1)
    b3_head = jnp.concatenate(
        [b3[:, 1:N + 1], b3[:, N + 1:2 * N + 1], b3[:, 0:1]], axis=1)
    w3_head = jnp.pad(w3_head, ((0, 0), (0, HEAD_W - (2 * N + 1))))
    b3_head = jnp.pad(b3_head, ((0, 0), (0, HEAD_W - (2 * N + 1))))

    # bf16 matmul operands (native MXU dtype on v5e/v6e/v7x); biases/emb stay f32.
    w1_c = w1.astype(jnp.bfloat16)
    w2_c = w2.astype(jnp.bfloat16)
    w3h_c = w3_head.astype(jnp.bfloat16)
    b1_c = b1.astype(jnp.float32)
    b2_c = b2.astype(jnp.float32)
    b3h_c = b3_head.astype(jnp.float32)
    emb_c = emb.astype(jnp.float32)

    # ---- Batch tiling. ----
    if block_b is None:
        block_b = min(1024, _round_up(max(B, 8), 8))
        # Keep >= 2 grid steps when the batch allows, so the "parallel" batch
        # axis can be sharded across both v7x TensorCores.
        if B >= 16 and pl.cdiv(B, block_b) < 2:
            block_b = _round_up(pl.cdiv(B, 2), 8)
    block_b = max(8, (block_b // 8) * 8)
    B_pad = _round_up(B, block_b)

    x_p = x.astype(jnp.bfloat16)
    bidx_p = beta_idx.reshape(B, 1).astype(jnp.int32)
    if B_pad != B:
        x_p = jnp.pad(x_p, ((0, B_pad - B), (0, 0)))
        bidx_p = jnp.pad(bidx_p, ((0, B_pad - B), (0, 0)))   # idx 0 is valid

    # Packed output width: lane-dense multiple of 128.
    # TODO(synk): for v5e-bound deployments set out_dtype=bf16 to halve the
    # dominant HBM writeback (costs output precision vs the f32 reference).
    OUT_W = _round_up(3 * N + 1, 128)
    out_itemsize = jnp.dtype(out_dtype).itemsize
    grid = (B_pad // block_b,)

    # VMEM budget: double-buffered x / bidx / out tiles + resident weights +
    # f32 intermediates, with 2x headroom (keeps clear of v7x's 64 MiB).
    weight_bytes = ((w1_c.size + w2_c.size + w3h_c.size) * 2
                    + (b1_c.size + b2_c.size + b3h_c.size + emb_c.size) * 4)
    tile_bytes = 2 * block_b * (N * 2 + 4) + 2 * block_b * OUT_W * out_itemsize
    interm_bytes = block_b * (6 * hidden + 3 * HEAD_W + 2 * OUT_W) * 4
    vmem_limit = int(min(128 * 2 ** 20,
                         max(16 * 2 ** 20,
                             2 * (2 * weight_bytes + tile_bytes + interm_bytes))))

    cost = pl.CostEstimate(
        flops=2 * B_pad * (N * hidden + hidden * hidden + hidden * HEAD_W),
        transcendentals=2 * B_pad * N,
        bytes_accessed=int(B_pad * (N * 2 + 4 + OUT_W * out_itemsize)
                           + weight_bytes),
    )

    call_args = (x_p, bidx_p, w1_c, b1_c, w2_c, b2_c, emb_c, w3h_c, b3h_c)

    def _run(single_buffer_weights, fused_store):
        pipe = pl.Buffered(1) if single_buffer_weights else None
        kernel = functools.partial(_opinion_kernel, N, nr_budgets, fused_store)

        def batch_spec(width):
            return pl.BlockSpec((block_b, width), lambda i: (i, 0))

        def const_spec(shape):
            if pipe is None:
                return pl.BlockSpec(shape, lambda i: (0, 0))
            return pl.BlockSpec(shape, lambda i: (0, 0), pipeline_mode=pipe)

        return pl.pallas_call(
            kernel,
            out_shape=jax.ShapeDtypeStruct((B_pad, OUT_W), out_dtype),
            grid=grid,
            in_specs=[
                batch_spec(N),                       # x (bf16)
                batch_spec(1),                       # beta_idx (int32)
                const_spec((N, hidden)),             # w1
                const_spec((1, hidden)),             # b1
                const_spec((hidden, hidden)),        # w2
                const_spec((1, hidden)),             # b2
                const_spec((nr_budgets, hidden)),    # embedding table
                const_spec((hidden, HEAD_W)),        # fused head weight [A|b|q]
                const_spec((1, HEAD_W)),             # fused head bias
            ],
            out_specs=pl.BlockSpec((block_b, OUT_W), lambda i: (i, 0)),
            compiler_params=pltpu.CompilerParams(
                dimension_semantics=("parallel",),
                vmem_limit_bytes=vmem_limit),
            cost_estimate=cost,
        )(*call_args)

    # Preferred config: single-buffered constant weights + single fused store.
    # Fall back gracefully if this JAX build rejects either feature.
    out = None
    last_err = None
    for cfg in ((True, True), (False, True), (False, False)):
        try:
            out = _run(*cfg)
            break
        except Exception as e:  # pragma: no cover - capability fallback only
            last_err = e
    if out is None:
        raise last_err

    out = out.astype(jnp.float32)
    w_star = out[:B, 0:N]
    A_diag = out[:B, N:2 * N]
    b_out = out[:B, 2 * N:3 * N]
    q_full = out[:B, 3 * N]
    return w_star, q_full, A_diag, b_out


def init_params(key, nr_agents, nr_budgets, hidden):
    """Deterministic synthetic init (uniform like PyTorch defaults)."""
    ks = jax.random.split(key, 7)
    n_out = 2 * nr_agents + 1

    def lin(kw, kb, fan_in, fan_out):
        bound = 1.0 / jnp.sqrt(fan_in)
        w = jax.random.uniform(kw, (fan_in, fan_out), jnp.float32, -bound, bound)
        b = jax.random.uniform(kb, (1, fan_out), jnp.float32, -bound, bound)
        return w, b

    w1, b1 = lin(ks[0], ks[1], nr_agents, hidden)
    w2, b2 = lin(ks[2], ks[3], hidden, hidden)
    emb = jax.random.normal(ks[4], (nr_budgets, hidden), jnp.float32)
    w3, b3 = lin(ks[5], ks[6], hidden, n_out)
    return (w1, b1, w2, b2, emb, w3, b3)


def reference_forward(x, beta_idx, params, *, nr_agents):
    """Pure-JAX reference mirroring the PyTorch module exactly."""
    w1, b1, w2, b2, emb, w3, b3 = params
    h = jnp.maximum(x @ w1 + b1, 0.0)
    h = jnp.maximum(h @ w2 + b2, 0.0)
    combined = h + emb[beta_idx]
    abq = combined @ w3 + b3
    q_vals = abq[:, 0]
    A_diag = jnp.exp(abq[:, 1:nr_agents + 1])
    b = abq[:, nr_agents + 1:]
    w_star = -(1.0 / A_diag) * b
    q_full = (q_vals + 0.5 * jnp.sum(w_star ** 2 * A_diag, axis=1)
              + jnp.sum(b * w_star, axis=1))
    return w_star, q_full, A_diag, b


if __name__ == "__main__":
    B = 16
    NR_AGENTS = 16
    NR_BUDGETS = 2
    HIDDEN = 64          # module default lin_hidden_out_size

    key = jax.random.PRNGKey(0)
    k_x, k_b, k_p = jax.random.split(key, 3)

    x = jax.random.normal(k_x, (B, NR_AGENTS), jnp.float32)
    beta_idx = jax.random.randint(k_b, (B,), 0, NR_BUDGETS, jnp.int32)
    params = init_params(k_p, NR_AGENTS, NR_BUDGETS, HIDDEN)

    # Auto tiling picks block_b=8 -> 2-step parallel grid (exercises megacore
    # sharding path and the batch pipeline).
    outs = opinion_net_forward(x, beta_idx, params,
                               nr_agents=NR_AGENTS,
                               nr_budgets=NR_BUDGETS,
                               hidden=HIDDEN)
    outs = jax.block_until_ready(outs)

    refs = reference_forward(x, beta_idx, params, nr_agents=NR_AGENTS)
    # Kernel deliberately feeds the MXU bf16 operands (f32 accumulation), so
    # compare against the f32 reference at bf16-level tolerance.
    for o, r in zip(outs, refs):
        assert o.shape == r.shape, (o.shape, r.shape)
        assert jnp.allclose(o, r, atol=2e-2, rtol=2e-2), (o, r)

    print("KERNEL_OK")
</pallas_src>

<mosaic_0001>
module attributes {stable_mosaic.version = 11 : i64} {
  func.func @_opinion_kernel(%arg0: i32, %arg1: memref<8x16xbf16, #tpu.memory_space<vmem>>, %arg2: memref<8x1xi32, #tpu.memory_space<vmem>>, %arg3: memref<16x64xbf16, #tpu.memory_space<vmem>>, %arg4: memref<1x64xf32, #tpu.memory_space<vmem>>, %arg5: memref<64x64xbf16, #tpu.memory_space<vmem>>, %arg6: memref<1x64xf32, #tpu.memory_space<vmem>>, %arg7: memref<2x64xf32, #tpu.memory_space<vmem>>, %arg8: memref<64x128xbf16, #tpu.memory_space<vmem>>, %arg9: memref<1x128xf32, #tpu.memory_space<vmem>>, %arg10: memref<8x128xf32, #tpu.memory_space<vmem>>) attributes {dimension_semantics = [#tpu.dimension_semantics<parallel>], iteration_bounds = array<i64: 2>, scalar_prefetch = 0 : i64, scratch_operands = 0 : i64, tpu.core_type = #tpu.core_type<tc>, window_params = [{transform_indices = @transform_0, window_bounds = array<i64: 8, 16>}, {transform_indices = @transform_1, window_bounds = array<i64: 8, 1>}, {pipeline_mode = #tpu.pipeline_mode<synchronous>, transform_indices = @transform_2, window_bounds = array<i64: 16, 64>}, {pipeline_mode = #tpu.pipeline_mode<synchronous>, transform_indices = @transform_3, window_bounds = array<i64: 1, 64>}, {pipeline_mode = #tpu.pipeline_mode<synchronous>, transform_indices = @transform_4, window_bounds = array<i64: 64, 64>}, {pipeline_mode = #tpu.pipeline_mode<synchronous>, transform_indices = @transform_5, window_bounds = array<i64: 1, 64>}, {pipeline_mode = #tpu.pipeline_mode<synchronous>, transform_indices = @transform_6, window_bounds = array<i64: 2, 64>}, {pipeline_mode = #tpu.pipeline_mode<synchronous>, transform_indices = @transform_7, window_bounds = array<i64: 64, 128>}, {pipeline_mode = #tpu.pipeline_mode<synchronous>, transform_indices = @transform_8, window_bounds = array<i64: 1, 128>}, {transform_indices = @transform_9, window_bounds = array<i64: 8, 128>}]} {
    %c0 = arith.constant 0 : index
    %c0_0 = arith.constant 0 : index
    %0 = vector.load %arg1[%c0, %c0_0] : memref<8x16xbf16, #tpu.memory_space<vmem>>, vector<8x16xbf16>
    %c0_1 = arith.constant 0 : index
    %c0_2 = arith.constant 0 : index
    %1 = vector.load %arg3[%c0_1, %c0_2] : memref<16x64xbf16, #tpu.memory_space<vmem>>, vector<16x64xbf16>
    %cst = arith.constant dense<0.000000e+00> : vector<8x64xf32>
    %2 = tpu.matmul %0, %1, %cst {dimension_numbers = #tpu.dot_dimension_numbers<[1], [0], [0], [1], [0, 0, 1, 1], [], []>} : vector<8x16xbf16>, vector<16x64xbf16>, vector<8x64xf32> -> vector<8x64xf32>
    %c0_3 = arith.constant 0 : index
    %c0_4 = arith.constant 0 : index
    %3 = vector.load %arg4[%c0_3, %c0_4] : memref<1x64xf32, #tpu.memory_space<vmem>>, vector<1x64xf32>
    %4 = vector.broadcast %3 : vector<1x64xf32> to vector<8x64xf32>
    %5 = arith.addf %2, %4 : vector<8x64xf32>
    %cst_5 = arith.constant 0.000000e+00 : f32
    %6 = vector.broadcast %cst_5 : f32 to vector<8x64xf32>
    %7 = arith.maximumf %5, %6 : vector<8x64xf32>
    %8 = arith.truncf %7 : vector<8x64xf32> to vector<8x64xbf16>
    %c0_6 = arith.constant 0 : index
    %c0_7 = arith.constant 0 : index
    %9 = vector.load %arg5[%c0_6, %c0_7] : memref<64x64xbf16, #tpu.memory_space<vmem>>, vector<64x64xbf16>
    %cst_8 = arith.constant dense<0.000000e+00> : vector<8x64xf32>
    %10 = tpu.matmul %8, %9, %cst_8 {dimension_numbers = #tpu.dot_dimension_numbers<[1], [0], [0], [1], [0, 0, 1, 1], [], []>} : vector<8x64xbf16>, vector<64x64xbf16>, vector<8x64xf32> -> vector<8x64xf32>
    %c0_9 = arith.constant 0 : index
    %c0_10 = arith.constant 0 : index
    %11 = vector.load %arg6[%c0_9, %c0_10] : memref<1x64xf32, #tpu.memory_space<vmem>>, vector<1x64xf32>
    %12 = vector.broadcast %11 : vector<1x64xf32> to vector<8x64xf32>
    %13 = arith.addf %10, %12 : vector<8x64xf32>
    %cst_11 = arith.constant 0.000000e+00 : f32
    %14 = vector.broadcast %cst_11 : f32 to vector<8x64xf32>
    %15 = arith.maximumf %13, %14 : vector<8x64xf32>
    %c0_12 = arith.constant 0 : index
    %c0_13 = arith.constant 0 : index
    %16 = vector.load %arg2[%c0_12, %c0_13] : memref<8x1xi32, #tpu.memory_space<vmem>>, vector<8x1xi32>
    %c0_14 = arith.constant 0 : index
    %c0_15 = arith.constant 0 : index
    %17 = vector.load %arg7[%c0_14, %c0_15] : memref<2x64xf32, #tpu.memory_space<vmem>>, vector<1x64xf32>
    %18 = vector.shape_cast %17 : vector<1x64xf32> to vector<1x64xf32>
    %19 = vector.broadcast %18 : vector<1x64xf32> to vector<8x64xf32>
    %c1_i32 = arith.constant 1 : i32
    %20 = vector.broadcast %c1_i32 : i32 to vector<8x1xi32>
    %21 = arith.cmpi eq, %16, %20 : vector<8x1xi32>
    %c1 = arith.constant 1 : index
    %c0_16 = arith.constant 0 : index
    %22 = vector.load %arg7[%c1, %c0_16] : memref<2x64xf32, #tpu.memory_space<vmem>>, vector<1x64xf32>
    %23 = vector.shape_cast %21 : vector<8x1xi1> to vector<8x1xi1>
    %24 = vector.broadcast %23 : vector<8x1xi1> to vector<8x64xi1>
    %25 = vector.shape_cast %22 : vector<1x64xf32> to vector<1x64xf32>
    %26 = vector.broadcast %25 : vector<1x64xf32> to vector<8x64xf32>
    %27 = arith.select %24, %26, %19 : vector<8x64xi1>, vector<8x64xf32>
    %28 = arith.addf %15, %27 : vector<8x64xf32>
    %29 = arith.truncf %28 : vector<8x64xf32> to vector<8x64xbf16>
    %c0_17 = arith.constant 0 : index
    %c0_18 = arith.constant 0 : index
    %30 = vector.load %arg8[%c0_17, %c0_18] : memref<64x128xbf16, #tpu.memory_space<vmem>>, vector<64x128xbf16>
    %cst_19 = arith.constant dense<0.000000e+00> : vector<8x128xf32>
    %31 = tpu.matmul %29, %30, %cst_19 {dimension_numbers = #tpu.dot_dimension_numbers<[1], [0], [0], [1], [0, 0, 1, 1], [], []>} : vector<8x64xbf16>, vector<64x128xbf16>, vector<8x128xf32> -> vector<8x128xf32>
    %c0_20 = arith.constant 0 : index
    %c0_21 = arith.constant 0 : index
    %32 = vector.load %arg9[%c0_20, %c0_21] : memref<1x128xf32, #tpu.memory_space<vmem>>, vector<1x128xf32>
    %33 = vector.broadcast %32 : vector<1x128xf32> to vector<8x128xf32>
    %34 = arith.addf %31, %33 : vector<8x128xf32>
    %35 = vector.extract_strided_slice %34 {offsets = [0, 0], sizes = [8, 16], strides = [1, 1]} : vector<8x128xf32> to vector<8x16xf32>
    %36 = vector.extract_strided_slice %34 {offsets = [0, 16], sizes = [8, 16], strides = [1, 1]} : vector<8x128xf32> to vector<8x16xf32>
    %37 = vector.extract_strided_slice %34 {offsets = [0, 32], sizes = [8, 1], strides = [1, 1]} : vector<8x128xf32> to vector<8x1xf32>
    %38 = math.exp %35 : vector<8x16xf32>
    %cst_22 = arith.constant 0.000000e+00 : f32
    %39 = vector.broadcast %cst_22 : f32 to vector<8x16xf32>
    %40 = arith.subf %39, %35 : vector<8x16xf32>
    %41 = math.exp %40 : vector<8x16xf32>
    %cst_23 = arith.constant 0.000000e+00 : f32
    %42 = vector.broadcast %cst_23 : f32 to vector<8x16xf32>
    %43 = arith.subf %42, %41 : vector<8x16xf32>
    %44 = arith.mulf %43, %36 : vector<8x16xf32>
    %45 = arith.mulf %36, %36 : vector<8x16xf32>
    %46 = arith.mulf %45, %41 : vector<8x16xf32>
    %cst_24 = arith.constant dense<0.000000e+00> : vector<8xf32>
    %47 = vector.multi_reduction <add>, %46, %cst_24 [1] : vector<8x16xf32> to vector<8xf32>
    %48 = vector.shape_cast %47 : vector<8xf32> to vector<8x1xf32>
    %cst_25 = arith.constant 5.000000e-01 : f32
    %49 = vector.broadcast %cst_25 : f32 to vector<8x1xf32>
    %50 = arith.mulf %49, %48 : vector<8x1xf32>
    %51 = arith.subf %37, %50 : vector<8x1xf32>
    %cst_26 = arith.constant 0.000000e+00 : f32
    %52 = vector.broadcast %cst_26 : f32 to vector<8x79xf32>
    %53 = tpu.concatenate %44, %38, %36, %51, %52 in 1 : vector<8x16xf32>, vector<8x16xf32>, vector<8x16xf32>, vector<8x1xf32>, vector<8x79xf32> -> vector<8x128xf32>
    %c0_27 = arith.constant 0 : index
    %c0_28 = arith.constant 0 : index
    %54 = vector.load %arg10[%c0_27, %c0_28] : memref<8x128xf32, #tpu.memory_space<vmem>>, vector<8x128xf32>
    tpu.vector_store %arg10[%c0_27, %c0_28], %53 {strides = array<i32>} : memref<8x128xf32, #tpu.memory_space<vmem>>, vector<8x128xf32>,
    return
  }
  func.func @transform_0(%arg0: i32) -> (i32, i32) {
    %c0_i32 = arith.constant 0 : i32
    %c0_i32_0 = arith.constant 0 : i32
    return %arg0, %c0_i32 : i32, i32
  }
  func.func @transform_1(%arg0: i32) -> (i32, i32) {
    %c0_i32 = arith.constant 0 : i32
    %c0_i32_0 = arith.constant 0 : i32
    return %arg0, %c0_i32 : i32, i32
  }
  func.func @transform_2(%arg0: i32) -> (i32, i32) {
    %c0_i32 = arith.constant 0 : i32
    %c0_i32_0 = arith.constant 0 : i32
    %c0_i32_1 = arith.constant 0 : i32
    return %c0_i32, %c0_i32_0 : i32, i32
  }
  func.func @transform_3(%arg0: i32) -> (i32, i32) {
    %c0_i32 = arith.constant 0 : i32
    %c0_i32_0 = arith.constant 0 : i32
    %c0_i32_1 = arith.constant 0 : i32
    return %c0_i32, %c0_i32_0 : i32, i32
  }
  func.func @transform_4(%arg0: i32) -> (i32, i32) {
    %c0_i32 = arith.constant 0 : i32
    %c0_i32_0 = arith.constant 0 : i32
    %c0_i32_1 = arith.constant 0 : i32
    return %c0_i32, %c0_i32_0 : i32, i32
  }
  func.func @transform_5(%arg0: i32) -> (i32, i32) {
    %c0_i32 = arith.constant 0 : i32
    %c0_i32_0 = arith.constant 0 : i32
    %c0_i32_1 = arith.constant 0 : i32
    return %c0_i32, %c0_i32_0 : i32, i32
  }
  func.func @transform_6(%arg0: i32) -> (i32, i32) {
    %c0_i32 = arith.constant 0 : i32
    %c0_i32_0 = arith.constant 0 : i32
    %c0_i32_1 = arith.constant 0 : i32
    return %c0_i32, %c0_i32_0 : i32, i32
  }
  func.func @transform_7(%arg0: i32) -> (i32, i32) {
    %c0_i32 = arith.constant 0 : i32
    %c0_i32_0 = arith.constant 0 : i32
    %c0_i32_1 = arith.constant 0 : i32
    return %c0_i32, %c0_i32_0 : i32, i32
  }
  func.func @transform_8(%arg0: i32) -> (i32, i32) {
    %c0_i32 = arith.constant 0 : i32
    %c0_i32_0 = arith.constant 0 : i32
    %c0_i32_1 = arith.constant 0 : i32
    return %c0_i32, %c0_i32_0 : i32, i32
  }
  func.func @transform_9(%arg0: i32) -> (i32, i32) {
    %c0_i32 = arith.constant 0 : i32
    %c0_i32_0 = arith.constant 0 : i32
    return %arg0, %c0_i32 : i32, i32
  }
}

module attributes {stable_mosaic.version = 11 : i64} {
  func.func @_opinion_kernel(%arg0: i32, %arg1: memref<8x16xbf16, #tpu.memory_space<vmem>>, %arg2: memref<8x1xi32, #tpu.memory_space<vmem>>, %arg3: memref<16x64xbf16, #tpu.memory_space<vmem>>, %arg4: memref<1x64xf32, #tpu.memory_space<vmem>>, %arg5: memref<64x64xbf16, #tpu.memory_space<vmem>>, %arg6: memref<1x64xf32, #tpu.memory_space<vmem>>, %arg7: memref<2x64xf32, #tpu.memory_space<vmem>>, %arg8: memref<64x128xbf16, #tpu.memory_space<vmem>>, %arg9: memref<1x128xf32, #tpu.memory_space<vmem>>, %arg10: memref<8x128xf32, #tpu.memory_space<vmem>>) attributes {dimension_semantics = [#tpu.dimension_semantics<parallel>], iteration_bounds = array<i64: 2>, scalar_prefetch = 0 : i64, scratch_operands = 0 : i64, tpu.core_type = #tpu.core_type<tc>, window_params = [{transform_indices = @transform_0, window_bounds = array<i64: 8, 16>}, {transform_indices = @transform_1, window_bounds = array<i64: 8, 1>}, {pipeline_mode = #tpu.pipeline_mode<synchronous>, transform_indices = @transform_2, window_bounds = array<i64: 16, 64>}, {pipeline_mode = #tpu.pipeline_mode<synchronous>, transform_indices = @transform_3, window_bounds = array<i64: 1, 64>}, {pipeline_mode = #tpu.pipeline_mode<synchronous>, transform_indices = @transform_4, window_bounds = array<i64: 64, 64>}, {pipeline_mode = #tpu.pipeline_mode<synchronous>, transform_indices = @transform_5, window_bounds = array<i64: 1, 64>}, {pipeline_mode = #tpu.pipeline_mode<synchronous>, transform_indices = @transform_6, window_bounds = array<i64: 2, 64>}, {pipeline_mode = #tpu.pipeline_mode<synchronous>, transform_indices = @transform_7, window_bounds = array<i64: 64, 128>}, {pipeline_mode = #tpu.pipeline_mode<synchronous>, transform_indices = @transform_8, window_bounds = array<i64: 1, 128>}, {transform_indices = @transform_9, window_bounds = array<i64: 8, 128>}]} {
    %c0 = arith.constant 0 : index
    %c0_0 = arith.constant 0 : index
    %0 = vector.load %arg1[%c0, %c0_0] : memref<8x16xbf16, #tpu.memory_space<vmem>>, vector<8x16xbf16>
    %c0_1 = arith.constant 0 : index
    %c0_2 = arith.constant 0 : index
    %1 = vector.load %arg3[%c0_1, %c0_2] : memref<16x64xbf16, #tpu.memory_space<vmem>>, vector<16x64xbf16>
    %cst = arith.constant dense<0.000000e+00> : vector<8x64xf32>
    %2 = tpu.matmul %0, %1, %cst {dimension_numbers = #tpu.dot_dimension_numbers<[1], [0], [0], [1], [0, 0, 1, 1], [], []>} : vector<8x16xbf16>, vector<16x64xbf16>, vector<8x64xf32> -> vector<8x64xf32>
    %c0_3 = arith.constant 0 : index
    %c0_4 = arith.constant 0 : index
    %3 = vector.load %arg4[%c0_3, %c0_4] : memref<1x64xf32, #tpu.memory_space<vmem>>, vector<1x64xf32>
    %4 = vector.broadcast %3 : vector<1x64xf32> to vector<8x64xf32>
    %5 = arith.addf %2, %4 : vector<8x64xf32>
    %cst_5 = arith.constant 0.000000e+00 : f32
    %6 = vector.broadcast %cst_5 : f32 to vector<8x64xf32>
    %7 = arith.maximumf %5, %6 : vector<8x64xf32>
    %8 = arith.truncf %7 : vector<8x64xf32> to vector<8x64xbf16>
    %c0_6 = arith.constant 0 : index
    %c0_7 = arith.constant 0 : index
    %9 = vector.load %arg5[%c0_6, %c0_7] : memref<64x64xbf16, #tpu.memory_space<vmem>>, vector<64x64xbf16>
    %cst_8 = arith.constant dense<0.000000e+00> : vector<8x64xf32>
    %10 = tpu.matmul %8, %9, %cst_8 {dimension_numbers = #tpu.dot_dimension_numbers<[1], [0], [0], [1], [0, 0, 1, 1], [], []>} : vector<8x64xbf16>, vector<64x64xbf16>, vector<8x64xf32> -> vector<8x64xf32>
    %c0_9 = arith.constant 0 : index
    %c0_10 = arith.constant 0 : index
    %11 = vector.load %arg6[%c0_9, %c0_10] : memref<1x64xf32, #tpu.memory_space<vmem>>, vector<1x64xf32>
    %12 = vector.broadcast %11 : vector<1x64xf32> to vector<8x64xf32>
    %13 = arith.addf %10, %12 : vector<8x64xf32>
    %cst_11 = arith.constant 0.000000e+00 : f32
    %14 = vector.broadcast %cst_11 : f32 to vector<8x64xf32>
    %15 = arith.maximumf %13, %14 : vector<8x64xf32>
    %c0_12 = arith.constant 0 : index
    %c0_13 = arith.constant 0 : index
    %16 = vector.load %arg2[%c0_12, %c0_13] : memref<8x1xi32, #tpu.memory_space<vmem>>, vector<8x1xi32>
    %c0_14 = arith.constant 0 : index
    %c0_15 = arith.constant 0 : index
    %17 = vector.load %arg7[%c0_14, %c0_15] : memref<2x64xf32, #tpu.memory_space<vmem>>, vector<1x64xf32>
    %18 = vector.shape_cast %17 : vector<1x64xf32> to vector<1x64xf32>
    %19 = vector.broadcast %18 : vector<1x64xf32> to vector<8x64xf32>
    %c1_i32 = arith.constant 1 : i32
    %20 = vector.broadcast %c1_i32 : i32 to vector<8x1xi32>
    %21 = arith.cmpi eq, %16, %20 : vector<8x1xi32>
    %c1 = arith.constant 1 : index
    %c0_16 = arith.constant 0 : index
    %22 = vector.load %arg7[%c1, %c0_16] : memref<2x64xf32, #tpu.memory_space<vmem>>, vector<1x64xf32>
    %23 = vector.shape_cast %21 : vector<8x1xi1> to vector<8x1xi1>
    %24 = vector.broadcast %23 : vector<8x1xi1> to vector<8x64xi1>
    %25 = vector.shape_cast %22 : vector<1x64xf32> to vector<1x64xf32>
    %26 = vector.broadcast %25 : vector<1x64xf32> to vector<8x64xf32>
    %27 = arith.select %24, %26, %19 : vector<8x64xi1>, vector<8x64xf32>
    %28 = arith.addf %15, %27 : vector<8x64xf32>
    %29 = arith.truncf %28 : vector<8x64xf32> to vector<8x64xbf16>
    %c0_17 = arith.constant 0 : index
    %c0_18 = arith.constant 0 : index
    %30 = vector.load %arg8[%c0_17, %c0_18] : memref<64x128xbf16, #tpu.memory_space<vmem>>, vector<64x128xbf16>
    %cst_19 = arith.constant dense<0.000000e+00> : vector<8x128xf32>
    %31 = tpu.matmul %29, %30, %cst_19 {dimension_numbers = #tpu.dot_dimension_numbers<[1], [0], [0], [1], [0, 0, 1, 1], [], []>} : vector<8x64xbf16>, vector<64x128xbf16>, vector<8x128xf32> -> vector<8x128xf32>
    %c0_20 = arith.constant 0 : index
    %c0_21 = arith.constant 0 : index
    %32 = vector.load %arg9[%c0_20, %c0_21] : memref<1x128xf32, #tpu.memory_space<vmem>>, vector<1x128xf32>
    %33 = vector.broadcast %32 : vector<1x128xf32> to vector<8x128xf32>
    %34 = arith.addf %31, %33 : vector<8x128xf32>
    %35 = vector.extract_strided_slice %34 {offsets = [0, 0], sizes = [8, 16], strides = [1, 1]} : vector<8x128xf32> to vector<8x16xf32>
    %36 = vector.extract_strided_slice %34 {offsets = [0, 16], sizes = [8, 16], strides = [1, 1]} : vector<8x128xf32> to vector<8x16xf32>
    %37 = vector.extract_strided_slice %34 {offsets = [0, 32], sizes = [8, 1], strides = [1, 1]} : vector<8x128xf32> to vector<8x1xf32>
    %38 = math.exp %35 : vector<8x16xf32>
    %cst_22 = arith.constant 0.000000e+00 : f32
    %39 = vector.broadcast %cst_22 : f32 to vector<8x16xf32>
    %40 = arith.subf %39, %35 : vector<8x16xf32>
    %41 = math.exp %40 : vector<8x16xf32>
    %cst_23 = arith.constant 0.000000e+00 : f32
    %42 = vector.broadcast %cst_23 : f32 to vector<8x16xf32>
    %43 = arith.subf %42, %41 : vector<8x16xf32>
    %44 = arith.mulf %43, %36 : vector<8x16xf32>
    %45 = arith.mulf %36, %36 : vector<8x16xf32>
    %46 = arith.mulf %45, %41 : vector<8x16xf32>
    %cst_24 = arith.constant dense<0.000000e+00> : vector<8xf32>
    %47 = vector.multi_reduction <add>, %46, %cst_24 [1] : vector<8x16xf32> to vector<8xf32>
    %48 = vector.shape_cast %47 : vector<8xf32> to vector<8x1xf32>
    %cst_25 = arith.constant 5.000000e-01 : f32
    %49 = vector.broadcast %cst_25 : f32 to vector<8x1xf32>
    %50 = arith.mulf %49, %48 : vector<8x1xf32>
    %51 = arith.subf %37, %50 : vector<8x1xf32>
    %cst_26 = arith.constant 0.000000e+00 : f32
    %52 = vector.broadcast %cst_26 : f32 to vector<8x79xf32>
    %53 = tpu.concatenate %44, %38, %36, %51, %52 in 1 : vector<8x16xf32>, vector<8x16xf32>, vector<8x16xf32>, vector<8x1xf32>, vector<8x79xf32> -> vector<8x128xf32>
    %c0_27 = arith.constant 0 : index
    %c0_28 = arith.constant 0 : index
    %54 = vector.load %arg10[%c0_27, %c0_28] : memref<8x128xf32, #tpu.memory_space<vmem>>, vector<8x128xf32>
    tpu.vector_store %arg10[%c0_27, %c0_28], %53 {strides = array<i32>} : memref<8x128xf32, #tpu.memory_space<vmem>>, vector<8x128xf32>,
    return
  }
  func.func @transform_0(%arg0: i32) -> (i32, i32) {
    %c0_i32 = arith.constant 0 : i32
    %c0_i32_0 = arith.constant 0 : i32
    return %arg0, %c0_i32 : i32, i32
  }
  func.func @transform_1(%arg0: i32) -> (i32, i32) {
    %c0_i32 = arith.constant 0 : i32
    %c0_i32_0 = arith.constant 0 : i32
    return %arg0, %c0_i32 : i32, i32
  }
  func.func @transform_2(%arg0: i32) -> (i32, i32) {
    %c0_i32 = arith.constant 0 : i32
    %c0_i32_0 = arith.constant 0 : i32
    %c0_i32_1 = arith.constant 0 : i32
    return %c0_i32, %c0_i32_0 : i32, i32
  }
  func.func @transform_3(%arg0: i32) -> (i32, i32) {
    %c0_i32 = arith.constant 0 : i32
    %c0_i32_0 = arith.constant 0 : i32
    %c0_i32_1 = arith.constant 0 : i32
    return %c0_i32, %c0_i32_0 : i32, i32
  }
  func.func @transform_4(%arg0: i32) -> (i32, i32) {
    %c0_i32 = arith.constant 0 : i32
    %c0_i32_0 = arith.constant 0 : i32
    %c0_i32_1 = arith.constant 0 : i32
    return %c0_i32, %c0_i32_0 : i32, i32
  }
  func.func @transform_5(%arg0: i32) -> (i32, i32) {
    %c0_i32 = arith.constant 0 : i32
    %c0_i32_0 = arith.constant 0 : i32
    %c0_i32_1 = arith.constant 0 : i32
    return %c0_i32, %c0_i32_0 : i32, i32
  }
  func.func @transform_6(%arg0: i32) -> (i32, i32) {
    %c0_i32 = arith.constant 0 : i32
    %c0_i32_0 = arith.constant 0 : i32
    %c0_i32_1 = arith.constant 0 : i32
    return %c0_i32, %c0_i32_0 : i32, i32
  }
  func.func @transform_7(%arg0: i32) -> (i32, i32) {
    %c0_i32 = arith.constant 0 : i32
    %c0_i32_0 = arith.constant 0 : i32
    %c0_i32_1 = arith.constant 0 : i32
    return %c0_i32, %c0_i32_0 : i32, i32
  }
  func.func @transform_8(%arg0: i32) -> (i32, i32) {
    %c0_i32 = arith.constant 0 : i32
    %c0_i32_0 = arith.constant 0 : i32
    %c0_i32_1 = arith.constant 0 : i32
    return %c0_i32, %c0_i32_0 : i32, i32
  }
  func.func @transform_9(%arg0: i32) -> (i32, i32) {
    %c0_i32 = arith.constant 0 : i32
    %c0_i32_0 = arith.constant 0 : i32
    return %arg0, %c0_i32 : i32, i32
  }
}

module attributes {stable_mosaic.version = 11 : i64} {
  func.func @_opinion_kernel(%arg0: i32, %arg1: memref<8x16xbf16, #tpu.memory_space<vmem>>, %arg2: memref<8x1xi32, #tpu.memory_space<vmem>>, %arg3: memref<16x64xbf16, #tpu.memory_space<vmem>>, %arg4: memref<1x64xf32, #tpu.memory_space<vmem>>, %arg5: memref<64x64xbf16, #tpu.memory_space<vmem>>, %arg6: memref<1x64xf32, #tpu.memory_space<vmem>>, %arg7: memref<2x64xf32, #tpu.memory_space<vmem>>, %arg8: memref<64x128xbf16, #tpu.memory_space<vmem>>, %arg9: memref<1x128xf32, #tpu.memory_space<vmem>>, %arg10: memref<8x128xf32, #tpu.memory_space<vmem>>) attributes {dimension_semantics = [#tpu.dimension_semantics<parallel>], iteration_bounds = array<i64: 2>, scalar_prefetch = 0 : i64, scratch_operands = 0 : i64, tpu.core_type = #tpu.core_type<tc>, window_params = [{transform_indices = @transform_0, window_bounds = array<i64: 8, 16>}, {transform_indices = @transform_1, window_bounds = array<i64: 8, 1>}, {pipeline_mode = #tpu.pipeline_mode<synchronous>, transform_indices = @transform_2, window_bounds = array<i64: 16, 64>}, {pipeline_mode = #tpu.pipeline_mode<synchronous>, transform_indices = @transform_3, window_bounds = array<i64: 1, 64>}, {pipeline_mode = #tpu.pipeline_mode<synchronous>, transform_indices = @transform_4, window_bounds = array<i64: 64, 64>}, {pipeline_mode = #tpu.pipeline_mode<synchronous>, transform_indices = @transform_5, window_bounds = array<i64: 1, 64>}, {pipeline_mode = #tpu.pipeline_mode<synchronous>, transform_indices = @transform_6, window_bounds = array<i64: 2, 64>}, {pipeline_mode = #tpu.pipeline_mode<synchronous>, transform_indices = @transform_7, window_bounds = array<i64: 64, 128>}, {pipeline_mode = #tpu.pipeline_mode<synchronous>, transform_indices = @transform_8, window_bounds = array<i64: 1, 128>}, {transform_indices = @transform_9, window_bounds = array<i64: 8, 128>}]} {
    %c0 = arith.constant 0 : index
    %c0_0 = arith.constant 0 : index
    %0 = vector.load %arg1[%c0, %c0_0] : memref<8x16xbf16, #tpu.memory_space<vmem>>, vector<8x16xbf16>
    %c0_1 = arith.constant 0 : index
    %c0_2 = arith.constant 0 : index
    %1 = vector.load %arg3[%c0_1, %c0_2] : memref<16x64xbf16, #tpu.memory_space<vmem>>, vector<16x64xbf16>
    %cst = arith.constant dense<0.000000e+00> : vector<8x64xf32>
    %2 = tpu.matmul %0, %1, %cst {dimension_numbers = #tpu.dot_dimension_numbers<[1], [0], [0], [1], [0, 0, 1, 1], [], []>} : vector<8x16xbf16>, vector<16x64xbf16>, vector<8x64xf32> -> vector<8x64xf32>
    %c0_3 = arith.constant 0 : index
    %c0_4 = arith.constant 0 : index
    %3 = vector.load %arg4[%c0_3, %c0_4] : memref<1x64xf32, #tpu.memory_space<vmem>>, vector<1x64xf32>
    %4 = vector.broadcast %3 : vector<1x64xf32> to vector<8x64xf32>
    %5 = arith.addf %2, %4 : vector<8x64xf32>
    %cst_5 = arith.constant 0.000000e+00 : f32
    %6 = vector.broadcast %cst_5 : f32 to vector<8x64xf32>
    %7 = arith.maximumf %5, %6 : vector<8x64xf32>
    %8 = arith.truncf %7 : vector<8x64xf32> to vector<8x64xbf16>
    %c0_6 = arith.constant 0 : index
    %c0_7 = arith.constant 0 : index
    %9 = vector.load %arg5[%c0_6, %c0_7] : memref<64x64xbf16, #tpu.memory_space<vmem>>, vector<64x64xbf16>
    %cst_8 = arith.constant dense<0.000000e+00> : vector<8x64xf32>
    %10 = tpu.matmul %8, %9, %cst_8 {dimension_numbers = #tpu.dot_dimension_numbers<[1], [0], [0], [1], [0, 0, 1, 1], [], []>} : vector<8x64xbf16>, vector<64x64xbf16>, vector<8x64xf32> -> vector<8x64xf32>
    %c0_9 = arith.constant 0 : index
    %c0_10 = arith.constant 0 : index
    %11 = vector.load %arg6[%c0_9, %c0_10] : memref<1x64xf32, #tpu.memory_space<vmem>>, vector<1x64xf32>
    %12 = vector.broadcast %11 : vector<1x64xf32> to vector<8x64xf32>
    %13 = arith.addf %10, %12 : vector<8x64xf32>
    %cst_11 = arith.constant 0.000000e+00 : f32
    %14 = vector.broadcast %cst_11 : f32 to vector<8x64xf32>
    %15 = arith.maximumf %13, %14 : vector<8x64xf32>
    %c0_12 = arith.constant 0 : index
    %c0_13 = arith.constant 0 : index
    %16 = vector.load %arg2[%c0_12, %c0_13] : memref<8x1xi32, #tpu.memory_space<vmem>>, vector<8x1xi32>
    %c0_14 = arith.constant 0 : index
    %c0_15 = arith.constant 0 : index
    %17 = vector.load %arg7[%c0_14, %c0_15] : memref<2x64xf32, #tpu.memory_space<vmem>>, vector<1x64xf32>
    %18 = vector.shape_cast %17 : vector<1x64xf32> to vector<1x64xf32>
    %19 = vector.broadcast %18 : vector<1x64xf32> to vector<8x64xf32>
    %c1_i32 = arith.constant 1 : i32
    %20 = vector.broadcast %c1_i32 : i32 to vector<8x1xi32>
    %21 = arith.cmpi eq, %16, %20 : vector<8x1xi32>
    %c1 = arith.constant 1 : index
    %c0_16 = arith.constant 0 : index
    %22 = vector.load %arg7[%c1, %c0_16] : memref<2x64xf32, #tpu.memory_space<vmem>>, vector<1x64xf32>
    %23 = vector.shape_cast %21 : vector<8x1xi1> to vector<8x1xi1>
    %24 = vector.broadcast %23 : vector<8x1xi1> to vector<8x64xi1>
    %25 = vector.shape_cast %22 : vector<1x64xf32> to vector<1x64xf32>
    %26 = vector.broadcast %25 : vector<1x64xf32> to vector<8x64xf32>
    %27 = arith.select %24, %26, %19 : vector<8x64xi1>, vector<8x64xf32>
    %28 = arith.addf %15, %27 : vector<8x64xf32>
    %29 = arith.truncf %28 : vector<8x64xf32> to vector<8x64xbf16>
    %c0_17 = arith.constant 0 : index
    %c0_18 = arith.constant 0 : index
    %30 = vector.load %arg8[%c0_17, %c0_18] : memref<64x128xbf16, #tpu.memory_space<vmem>>, vector<64x128xbf16>
    %cst_19 = arith.constant dense<0.000000e+00> : vector<8x128xf32>
    %31 = tpu.matmul %29, %30, %cst_19 {dimension_numbers = #tpu.dot_dimension_numbers<[1], [0], [0], [1], [0, 0, 1, 1], [], []>} : vector<8x64xbf16>, vector<64x128xbf16>, vector<8x128xf32> -> vector<8x128xf32>
    %c0_20 = arith.constant 0 : index
    %c0_21 = arith.constant 0 : index
    %32 = vector.load %arg9[%c0_20, %c0_21] : memref<1x128xf32, #tpu.memory_space<vmem>>, vector<1x128xf32>
    %33 = vector.broadcast %32 : vector<1x128xf32> to vector<8x128xf32>
    %34 = arith.addf %31, %33 : vector<8x128xf32>
    %35 = vector.extract_strided_slice %34 {offsets = [0, 0], sizes = [8, 16], strides = [1, 1]} : vector<8x128xf32> to vector<8x16xf32>
    %36 = vector.extract_strided_slice %34 {offsets = [0, 16], sizes = [8, 16], strides = [1, 1]} : vector<8x128xf32> to vector<8x16xf32>
    %37 = vector.extract_strided_slice %34 {offsets = [0, 32], sizes = [8, 1], strides = [1, 1]} : vector<8x128xf32> to vector<8x1xf32>
    %38 = math.exp %35 : vector<8x16xf32>
    %cst_22 = arith.constant 0.000000e+00 : f32
    %39 = vector.broadcast %cst_22 : f32 to vector<8x16xf32>
    %40 = arith.subf %39, %35 : vector<8x16xf32>
    %41 = math.exp %40 : vector<8x16xf32>
    %cst_23 = arith.constant 0.000000e+00 : f32
    %42 = vector.broadcast %cst_23 : f32 to vector<8x16xf32>
    %43 = arith.subf %42, %41 : vector<8x16xf32>
    %44 = arith.mulf %43, %36 : vector<8x16xf32>
    %45 = arith.mulf %36, %36 : vector<8x16xf32>
    %46 = arith.mulf %45, %41 : vector<8x16xf32>
    %cst_24 = arith.constant dense<0.000000e+00> : vector<8xf32>
    %47 = vector.multi_reduction <add>, %46, %cst_24 [1] : vector<8x16xf32> to vector<8xf32>
    %48 = vector.shape_cast %47 : vector<8xf32> to vector<8x1xf32>
    %cst_25 = arith.constant 5.000000e-01 : f32
    %49 = vector.broadcast %cst_25 : f32 to vector<8x1xf32>
    %50 = arith.mulf %49, %48 : vector<8x1xf32>
    %51 = arith.subf %37, %50 : vector<8x1xf32>
    %c0_26 = arith.constant 0 : index
    %c0_27 = arith.constant 0 : index
    %52 = vector.load %arg10[%c0_26, %c0_27] : memref<8x128xf32, #tpu.memory_space<vmem>>, vector<8x16xf32>
    tpu.vector_store %arg10[%c0_26, %c0_27], %44 {strides = array<i32>} : memref<8x128xf32, #tpu.memory_space<vmem>>, vector<8x16xf32>,
    %c0_28 = arith.constant 0 : index
    %c16 = arith.constant 16 : index
    %53 = vector.load %arg10[%c0_28, %c16] : memref<8x128xf32, #tpu.memory_space<vmem>>, vector<8x16xf32>
    tpu.vector_store %arg10[%c0_28, %c16], %38 {strides = array<i32>} : memref<8x128xf32, #tpu.memory_space<vmem>>, vector<8x16xf32>,
    %c0_29 = arith.constant 0 : index
    %c32 = arith.constant 32 : index
    %54 = vector.load %arg10[%c0_29, %c32] : memref<8x128xf32, #tpu.memory_space<vmem>>, vector<8x16xf32>
    tpu.vector_store %arg10[%c0_29, %c32], %36 {strides = array<i32>} : memref<8x128xf32, #tpu.memory_space<vmem>>, vector<8x16xf32>,
    %c0_30 = arith.constant 0 : index
    %c48 = arith.constant 48 : index
    %55 = vector.load %arg10[%c0_30, %c48] : memref<8x128xf32, #tpu.memory_space<vmem>>, vector<8x1xf32>
    tpu.vector_store %arg10[%c0_30, %c48], %51 {strides = array<i32>} : memref<8x128xf32, #tpu.memory_space<vmem>>, vector<8x1xf32>,
    %cst_31 = arith.constant 0.000000e+00 : f32
    %56 = vector.broadcast %cst_31 : f32 to vector<8x79xf32>
    %c0_32 = arith.constant 0 : index
    %c49 = arith.constant 49 : index
    %57 = vector.load %arg10[%c0_32, %c49] : memref<8x128xf32, #tpu.memory_space<vmem>>, vector<8x79xf32>
    tpu.vector_store %arg10[%c0_32, %c49], %56 {strides = array<i32>} : memref<8x128xf32, #tpu.memory_space<vmem>>, vector<8x79xf32>,
    return
  }
  func.func @transform_0(%arg0: i32) -> (i32, i32) {
    %c0_i32 = arith.constant 0 : i32
    %c0_i32_0 = arith.constant 0 : i32
    return %arg0, %c0_i32 : i32, i32
  }
  func.func @transform_1(%arg0: i32) -> (i32, i32) {
    %c0_i32 = arith.constant 0 : i32
    %c0_i32_0 = arith.constant 0 : i32
    return %arg0, %c0_i32 : i32, i32
  }
  func.func @transform_2(%arg0: i32) -> (i32, i32) {
    %c0_i32 = arith.constant 0 : i32
    %c0_i32_0 = arith.constant 0 : i32
    %c0_i32_1 = arith.constant 0 : i32
    return %c0_i32, %c0_i32_0 : i32, i32
  }
  func.func @transform_3(%arg0: i32) -> (i32, i32) {
    %c0_i32 = arith.constant 0 : i32
    %c0_i32_0 = arith.constant 0 : i32
    %c0_i32_1 = arith.constant 0 : i32
    return %c0_i32, %c0_i32_0 : i32, i32
  }
  func.func @transform_4(%arg0: i32) -> (i32, i32) {
    %c0_i32 = arith.constant 0 : i32
    %c0_i32_0 = arith.constant 0 : i32
    %c0_i32_1 = arith.constant 0 : i32
    return %c0_i32, %c0_i32_0 : i32, i32
  }
  func.func @transform_5(%arg0: i32) -> (i32, i32) {
    %c0_i32 = arith.constant 0 : i32
    %c0_i32_0 = arith.constant 0 : i32
    %c0_i32_1 = arith.constant 0 : i32
    return %c0_i32, %c0_i32_0 : i32, i32
  }
  func.func @transform_6(%arg0: i32) -> (i32, i32) {
    %c0_i32 = arith.constant 0 : i32
    %c0_i32_0 = arith.constant 0 : i32
    %c0_i32_1 = arith.constant 0 : i32
    return %c0_i32, %c0_i32_0 : i32, i32
  }
  func.func @transform_7(%arg0: i32) -> (i32, i32) {
    %c0_i32 = arith.constant 0 : i32
    %c0_i32_0 = arith.constant 0 : i32
    %c0_i32_1 = arith.constant 0 : i32
    return %c0_i32, %c0_i32_0 : i32, i32
  }
  func.func @transform_8(%arg0: i32) -> (i32, i32) {
    %c0_i32 = arith.constant 0 : i32
    %c0_i32_0 = arith.constant 0 : i32
    %c0_i32_1 = arith.constant 0 : i32
    return %c0_i32, %c0_i32_0 : i32, i32
  }
  func.func @transform_9(%arg0: i32) -> (i32, i32) {
    %c0_i32 = arith.constant 0 : i32
    %c0_i32_0 = arith.constant 0 : i32
    return %arg0, %c0_i32 : i32, i32
  }
}

</mosaic_0001>

<bundles_post_ra>
// kernel: tpu_custom_call.1
= control target key start
LH: loop header
LB: loop body
LE: loop exit
PB: predicated region body
PF: predicated region fallthrough
CT: control target
= control target key end

     0   :  { %s1550_s0 = inlined_call_operand.hbm [shape: bf16[16,16], index: 0, kind: input, shape index: {}]   ;;  %s1551_s1 = inlined_call_operand.vmem [shape: s32[16,1], index: 1, kind: input, shape index: {}]   ;;  %s1552_s2 = inlined_call_operand.hbm [shape: bf16[16,64], index: 2, kind: input, shape index: {}]   ;;  %s1553_s3 = inlined_call_operand.hbm [shape: f32[1,64], index: 3, kind: input, shape index: {}]   ;;  %s1554_s4 = inlined_call_operand.vmem [shape: bf16[64,64], index: 4, kind: input, shape index: {}]   ;;  %s1555_s5 = inlined_call_operand.vmem [shape: f32[1,64], index: 5, kind: input, shape index: {}]   ;;  %s1556_s6 = inlined_call_operand.vmem [shape: f32[2,64], index: 6, kind: input, shape index: {}]   ;;  %s1557_s7 = inlined_call_operand.hbm [shape: bf16[64,128], index: 7, kind: input, shape index: {}]   ;;  %s1558_s8 = inlined_call_operand.vmem [shape: f32[1,128], index: 8, kind: input, shape index: {}]   ;;  %s1559_s9 = inlined_call_operand.hbm [shape: f32[16,128], index: 9, kind: output, shape index: {}]  }
   0x1   :  { %1566 = sst [smem:[#allocation17_spill]] %s1559_s9 }
   0x2   :  { %14 = vsyncpa [#allocation3], 0 }
   0x3   :  { %16 = vsyncpa [#allocation3 + $0x1], 0 }
   0x4   :  { %17 = vsyncpa [#allocation6], 0 }
   0x5   :  { %18 = vsyncpa [#allocation9], 0 }
   0x6   :  { %19 = vsyncpa [#allocation4], 0 }
   0x7   :  { %21 = vsyncpa [#allocation4 + $0x1], 0  ;;  %s1254_s30 = smov 0   ;;  %s1256_s10 = smov 0  }
   0x8   :  { %s1258_s11 = smov 0   ;;  %s1260_s12 = smov 0  }
   0x9 LB: > { %1567 = sst [smem:[#allocation15_spill]] %s1178_s30  ;;  %s1275_s13 = sadd.s32 4294967295, %s1190_s12   ;;  %s1190_s12 = sphi %s1260_s12, %s1591_s12   ;;  %s1186_s11 = sphi %s1258_s11, %s1590_s11   ;;  %s1182_s10 = sphi %s1256_s10, %s1589_s10   ;;  %s1178_s30 = sphi %s1254_s30, %s1588_s30  }
   0xa   : > { %s826_s14 = sadd.s32 4294967294, %s1190_s12   ;;  %p47_p0 = scmp.ne.s32.totalorder %s1182_s10, %s1178_s30 }
   0xb   : > { %p1560_p1 = scmp.eq.s32.totalorder %s1275_s13, 0  ;;  %p250_p3 = scmp.eq.s32.totalorder %s826_s14, 1 }
   0xc   : > { %p827_p5 = scmp.ge.s32.totalorder %s1190_s12, 1  ;;  %p257_p7 = scmp.lt.s32.totalorder %s1190_s12, 3 }
   0xd   : > { %p1284_p4 = por %p1560_p1, %p47_p0  ;;  %p1289_p6 = por %p250_p3, %p47_p0 }
   0xe   : > { %p1294_p8 = pnand %p827_p5, %p257_p7  ;;  %s1192_s18 = smov [#allocation5]  }
   0xf   : > { %s1568_s15 = scalar_select %p1284_p4, 1, 0 }
  0x10   : > { %s1569_s16 = scalar_select %p1289_p6, 1, 0 }
  0x11   : > { %s1571_s17 = scalar_select %p1294_p8, 1, 0 }
  0x12   : > { %1570 = sst [smem:[#allocation16_spill]] %s1569_s16  ;;  %s269_s19 = sshll.u32 %s1192_s18, 4  ;;  %s1298_s19 = int_to_ptr.vmem [resolvable:$true] %s269_s19 }
  0x13   : > { %p920_p9 = pneg %p1294_p8  ;;  %s1193_s21 = smov [#allocation7]  }
  0x14   : > { %s283_s22 = sshll.u32 %s1193_s21, 4  ;;  %s1194_s23 = smov [#allocation8]   ;;  %s1309_s22 = int_to_ptr.vmem [resolvable:$true] %s283_s22 }
  0x15   : > { %p1305_p11 = pnand %p920_p9, %p1560_p1  ;;  %s1311_s24 = sshll.u32 %s1194_s23, 4  ;;  %s303_s24 = int_to_ptr.vmem [resolvable:$true] %s1311_s24 }
  0x16   : > { %s1002_s27 = scalar_lea.hbm %s1552_s2, 128 }
  0x17   : > { %p1003_p12 = scmp.ne.s32.totalorder %s1552_s2, %s1002_s27  ;;  %p1321_p13 = pneg %p1305_p11 }
  0x18   : > { %p1009_p5 = scmp.lt.u32.totalorder %s1002_s27, %s1552_s2 }
  0x19   : > { %p1005_p0 = pnand %p1321_p13, %p1003_p12 }
  0x1b   : > { %p1006_p3 = pneg %p1005_p0 }
  0x1d   : > { %p1011_p7 = pnand %p1009_p5, %p1006_p3 }
  0x1f   : > { %1014 = shalt.err (!%p1011_p7)
}
  0x20   : > { %s1015_s23 = scalar_lea.vmem %s1298_s19, 128  ;;  %p1023_p2 = scmp.lt.s32.totalorder %s1298_s19, %s1298_s19 }
  0x21   : > { %p1016_p9 = scmp.ne.s32.totalorder %s1298_s19, %s1015_s23  ;;  %p1024_p6 = scmp.lt.s32.totalorder %s1015_s23, %s1015_s23 }
  0x23   : > { %p1018_p10 = pnand %p1016_p9, %p1321_p13  ;;  %p1025_p12 = por %p1024_p6, %p1023_p2 }
  0x25   : > { %p1019_p1 = pneg %p1018_p10 }
  0x27   : > { %p1026_p0 = pnand %p1025_p12, %p1019_p1 }
  0x29   : > { %1029 = shalt.err (!%p1026_p0)
}
  0x2a   : > { %s1195_s25 = smov 64   ;;  %s1196_s26 = smov 4  }
  0x2b   : > { %923 = dma.hbm_to_vmem [thread:$0]  (!%p1305_p11), %s1552_s2, 128, %s1298_s19, [#allocation6], %s1195_s25, %s1195_s25, %s1196_s26  }
  0x2c   : > { %s1030_s21 = scalar_lea.hbm %s1553_s3, 16 }
  0x2d   : > { %p1031_p1 = scmp.ne.s32.totalorder %s1553_s3, %s1030_s21  ;;  %p1037_p10 = scmp.lt.u32.totalorder %s1030_s21, %s1553_s3 }
  0x2f   : > { %p1033_p2 = pnand %p1031_p1, %p1321_p13 }
  0x31   : > { %p1034_p6 = pneg %p1033_p2 }
  0x33   : > { %p1039_p3 = pnand %p1037_p10, %p1034_p6 }
  0x35   : > { %1042 = shalt.err (!%p1039_p3)
}
  0x36   : > { %s1043_s19 = scalar_lea.vmem %s1309_s22, 16  ;;  %s1050_s16 = scalar_lea.vmem %s1309_s22, 32 }
  0x37   : > { %p1044_p5 = scmp.ne.s32.totalorder %s1309_s22, %s1043_s19  ;;  %p1051_p12 = scmp.lt.s32.totalorder %s1309_s22, %s1309_s22 }
  0x38   : > { %p1052_p0 = scmp.lt.s32.totalorder %s1050_s16, %s1043_s19 }
  0x39   : > { %p1046_p7 = pnand %p1044_p5, %p1321_p13 }
  0x3a   : > { %p1053_p1 = por %p1052_p0, %p1051_p12 }
  0x3b   : > { %p1047_p9 = pneg %p1046_p7 }
  0x3d   : > { %p1054_p2 = pnand %p1053_p1, %p1047_p9 }
  0x3f   : > { %1057 = shalt.err (!%p1054_p2)
}
  0x40   : > { %926 = dma.hbm_to_vmem [thread:$0]  (!%p1305_p11), %s1553_s3, 16, %s1309_s22, [#allocation6]  }
  0x41   : > { %s1058_s29 = scalar_lea.hbm %s1557_s7, 512 }
  0x42   : > { %p1059_p6 = scmp.ne.s32.totalorder %s1557_s7, %s1058_s29  ;;  %p1065_p5 = scmp.lt.u32.totalorder %s1058_s29, %s1557_s7 }
  0x44   : > { %p1061_p10 = pnand %p1059_p6, %p1321_p13 }
  0x46   : > { %p1062_p3 = pneg %p1061_p10 }
  0x48   : > { %p1067_p7 = pnand %p1065_p5, %p1062_p3 }
  0x4a   : > { %1070 = shalt.err (!%p1067_p7)
}
  0x4b   : > { %s1071_s16 = scalar_lea.vmem %s303_s24, 512  ;;  %p1079_p1 = scmp.lt.s32.totalorder %s303_s24, %s303_s24 }
  0x4c   : > { %p1072_p9 = scmp.ne.s32.totalorder %s303_s24, %s1071_s16  ;;  %p1080_p2 = scmp.lt.s32.totalorder %s1071_s16, %s1071_s16 }
  0x4e   : > { %p1074_p12 = pnand %p1072_p9, %p1321_p13  ;;  %p1081_p4 = por %p1080_p2, %p1079_p1 }
  0x50   : > { %p1075_p0 = pneg %p1074_p12 }
  0x52   : > { %p1082_p8 = pnand %p1081_p4, %p1075_p0 }
  0x54   : > { %1085 = shalt.err (!%p1082_p8)
}
  0x55   : > { %929 = dma.hbm_to_vmem [thread:$0]  (!%p1305_p11), %s1557_s7, 512, %s303_s24, [#allocation9], %s1195_s25, %s1195_s25, %s1196_s26  }
  0x56   : > { %s1392_s14 = sadd.s32 1, %s1190_s12   ;;  %s34_s30 = sadd.s32 1, %s1186_s11 }
  0x57   : > { %s31_s20 = ssub.s32 %s1190_s12, %s1392_s14  ;;  %p41_p8 = scmp.ne.s32.totalorder %s1186_s11, %s1182_s10 }
  0x58   : > { %p32_p4 = scmp.eq.s32.totalorder %s31_s20, 0  ;;  %p42_p13 = scmp.eq.s32.totalorder %s1190_s12, 0 }
  0x59   : > { %p941_p6 = scmp.lt.s32.totalorder %s1190_s12, 2  ;;  %p1574_p3 = scmp.eq.s32.totalorder %s1275_s13, 1 }
  0x5a   : > { %s1402_s27 = scalar_select %p32_p4, %s1186_s11, %s34_s30  }
  0x5b   : > { %p43_p10 = por %p42_p13, %p41_p8  ;;  %p1406_p5 = por %p1574_p3, %p41_p8 }
  0x5c   : > { %s319_s29 = sand.u32 1, %s1186_s11   ;;  %s833_s18 = sshll.u32 %s1190_s12, 6 }
  0x5d   : > { %s832_s24 = sshll.u32 %s319_s29, 2  ;;  %s1415_s21 = scalar_lea.hbm %s1550_s0, %s833_s18 }
  0x5e   : > { %s323_s23 = scalar_lea.vmem [#allocation2], %s832_s24  ;;  %p1417_p11 = pnand %p941_p6, %p43_p10 }
  0x5f   : > { %s330_s19 = sshll.u32 %s323_s23, 4  ;;  %s320_s22 = scalar_lea.sflag [#allocation3], %s319_s29  ;;  %s1421_s19 = int_to_ptr.vmem [resolvable:$true] %s330_s19 }
  0x60   : > { %s1086_s9 = scalar_lea.hbm %s1415_s21, 64  ;;  %p1088_p9 = pneg %p1417_p11 }
  0x61   : > { %p1087_p7 = scmp.ne.s32.totalorder %s1415_s21, %s1086_s9  ;;  %s1091_s18 = scalar_lea.hbm %s1550_s0, 128 }
  0x62   : > { %p1092_p1 = scmp.lt.u32.totalorder %s1415_s21, %s1550_s0  ;;  %p1093_p2 = scmp.lt.u32.totalorder %s1091_s18, %s1086_s9 }
  0x63   : > { %p1089_p12 = pnand %p1088_p9, %p1087_p7  ;;  %p1095_p8 = scmp.lt.u32.totalorder %s1086_s9, %s1415_s21 }
  0x64   : > { %p1094_p4 = por %p1093_p2, %p1092_p1 }
  0x65   : > { %p1090_p0 = pneg %p1089_p12 }
  0x66   : > { %p1096_p13 = por %p1095_p8, %p1094_p4 }
  0x68   : > { %p1097_p6 = pnand %p1096_p13, %p1090_p0 }
  0x6a   : > { %1100 = shalt.err (!%p1097_p6)
}
  0x6b   : > { %s1101_s29 = scalar_lea.vmem %s1421_s19, 64  ;;  %s1197_s26 = smov [#allocation2]  }
  0x6c   : > { %p1102_p10 = scmp.ne.s32.totalorder %s1421_s19, %s1101_s29  ;;  %s1106_s23 = sshll.u32 %s1197_s26, 4  ;;  %s1107_s23 = int_to_ptr.vmem [resolvable:$false] %s1106_s23 }
  0x6d   : > { %s1108_s20 = scalar_lea.vmem %s1107_s23, 128  ;;  %p1109_p12 = scmp.lt.s32.totalorder %s1421_s19, %s1107_s23 }
  0x6e   : > { %p1104_p3 = pnand %p1102_p10, %p1088_p9  ;;  %p1110_p1 = scmp.lt.s32.totalorder %s1108_s20, %s1101_s29 }
  0x70   : > { %p1105_p7 = pneg %p1104_p3  ;;  %p1111_p2 = por %p1110_p1, %p1109_p12 }
  0x72   : > { %p1112_p4 = pnand %p1111_p2, %p1105_p7 }
  0x74   : > { %1115 = shalt.err (!%p1112_p4)
}
  0x75   : > { %933 = dma.hbm_to_vmem [thread:$0]  (!%p1417_p11), %s1415_s21, 64, %s1421_s19, %s320_s22  }
  0x76   : > { %p1577_p0 = scmp.ne.s32.totalorder %s1571_s17, 0 }
  0x77   : > { %s1451_s9 = sand.u32 (!%p1577_p0), 1, %s1182_s10   ;;  %p1578_p9 = scmp.ne.s32.totalorder (!%p1577_p0), %s1568_s15, 0 }
  0x78   : > { %346 = sbr.rel (%p1577_p0) target bundleno = 1317 (0x525), region = 56  ;;  %s835_s30 = sshll.u32 (!%p1577_p0), %s1451_s9, 2 }
  0x79   : > { %s349_s18 = scalar_lea.sflag (!%p1577_p0), [#allocation3], %s1451_s9  ;;  %s352_s24 = scalar_lea.vmem (!%p1577_p0), [#allocation2], %s835_s30 }
  0x7f   : > { %1161 = dma.done.wait (%p1578_p9), %s349_s18, 64  }
  0x80   : > { %1163 = vsyncadd (%p1578_p9), %s349_s18, 4294967232  ;;  %p1579_p8 = scmp.eq.s32.totalorder %s1275_s13, 0 }
  0x82   : > { %1165 = dma.done.wait (%p1579_p8), [#allocation6], 144   ;;  %p1580_p11 = pmov %p1579_p8 }
  0x83   : > { %p1581_p13 = pmov %p1579_p8 }
  0x84   : > { %1167 = vsyncadd (%p1580_p11), [#allocation6], 4294967152 }
  0x85   : > { %1169 = dma.done.wait (%p1581_p13), [#allocation9], 512   ;;  %p1582_p6 = pmov %p1579_p8 }
  0x86   : > { %v1198_v0 = vmov 0.0   ;;  %vm1199_vm0 = vmmov 0   ;;  %v989_v1 = vld [vmem:[#allocation5] sm:$0xff]   ;;  %v408_v2 = vld [vmem:[%s352_s24] sm:$0xf]  ;;  %vm424_vm1 = vcmask 130048  }
  0x87   : > { %1171 = vsyncadd (%p1582_p6), [#allocation9], 4294966784  ;;  %874 = vmatprep.subr.bf16.mxu0 %v1198_v0  ;;  %876 = vmatprep.mubr.msk.bf16.mxu0 %vm1199_vm0, %v1198_v0  ;;  %v990_v3 = vld [vmem:[%s1554_s4] sm:$0xff]   ;;  %v991_v4 = vld [vmem:[%s1554_s4 + $0x8] sm:$0xff]   ;;  %p403_p10 = scmp.lt.s32.totalorder %s1275_s13, 1  ;;  %v1200_v8 = vmov 0  }
  0x88   : > { %880 = vmatprep.subr.bf16.mxu1 %v1198_v0  ;;  %888 = vmatprep.mubr.msk.bf16.mxu1 %vm1199_vm0, %v1198_v0  ;;  %v992_v5 = vld [vmem:[%s1554_s4 + $0x10] sm:$0xff]   ;;  %v993_v6 = vld [vmem:[%s1554_s4 + $0x18] sm:$0xff]   ;;  %vm509_vm3 = vcmask 523264   ;;  %v996_v20 = vld [vmem:[#allocation8 + $0x10] sm:$0xff]   ;;  %s1201_s29 = smov 16   ;;  %vm694_vm5 = vcmask 261120  }
  0x89   : > { %875 = vmatpush3.bf16.msra.mxu0 %v989_v1  ;;  %881 = vmatpush3.bf16.msra.mxu1 %v990_v3  ;;  %v994_v7 = vld [vmem:[#allocation8] sm:$0xff]   ;;  %s404_s26 = scalar_select %p403_p10, %s1275_s13, 1  ;;  %v995_v9 = vld [vmem:[#allocation8 + $0x8] sm:$0xff]   ;;  %v841_v12 = vld [vmem:[#allocation7] ss:$0 sm:$0xff]  ;;  %vm696_vm6 = vcmask 392192  }
  0x8a   : > { %892 = vmatprep.subr.bf16.mxu0 %v1198_v0  ;;  %882 = vmatprep.subr.bf16.mxu1 %v1198_v0  ;;  %v997_v21 = vld [vmem:[#allocation8 + $0x18] sm:$0xff]   ;;  %v844_v23 = vld [vmem:[%s1555_s5] ss:$0 sm:$0xff]  ;;  %v851_v25 = vld [vmem:[%s1556_s6 + $0x1] ss:$0 sm:$0xff]  ;;  %s859_s20 = sshll.u32 %s1275_s13, 7 }
  0x8b   : > { %988 = vset.pattern.permute.xlu0 %v1200_v8  ;;  %s840_s23 = sshll.u32 %s404_s26, 3  ;;  %v850_v24 = vld [vmem:[%s1556_s6] ss:$0 sm:$0xff]  ;;  %s1202_s26 = smov 112   ;;  %vm698_vm7 = vcmask 400384  }
  0x8c   : > { %877 = vmatmul.mubr.msk.bf16.vlgmr.msra.gmra.mrb[0].mxu0 %vm424_vm1, %v408_v2  ;;  %s406_s18 = scalar_lea.vmem %s1551_s1, %s840_s23  ;;  %v852_v35 = vld [vmem:[%s1558_s8] ss:$0 sm:$0xff]  ;;  %s839_s23 = sshll.u32 %s1451_s9, 3 }
  0x8d   : > { %900 = vmatprep.mubr.msk.bf16.mxu0 %vm1199_vm0, %v1198_v0  ;;  %883 = vmatpush3.bf16.msra.mxu1 %v991_v4  ;;  %v554_v10 = vld [vmem:[%s406_s18] sm:$0xff]  ;;  %s402_s30 = scalar_lea.vmem [#allocation10], %s839_s23  ;;  %s1583_s17 = sld [smem:[#allocation17_spill]] }
  0x8e   : > { %884 = vmatprep.subr.bf16.mxu1 %v1198_v0  ;;  %893 = vmatpush3.bf16.msra.mxu0 %v994_v7  ;;  %vm560_vm2 = vcmp.eq.s32.totalorder %v554_v10, 1  ;;  %s715_s18 = sshll.u32 %s402_s30, 4  ;;  %s702_s13 = scalar_lea.sflag [#allocation4], %s1451_s9  ;;  %s1508_s18 = int_to_ptr.vmem [resolvable:$true] %s715_s18 }
  0x8f   : > { %894 = vmatprep.subr.bf16.mxu0 %v1198_v0  ;;  %v562_v11 = vsel %vm560_vm2, 1, %v1200_v8  ;;  %s1116_s19 = scalar_lea.vmem %s1508_s18, 128  ;;  %s1203_s16 = smov [#allocation10]  }
  0x90   : > { %564 = vperm.xlu0 %988, %v562_v11   ;;  %p1117_p3 = scmp.ne.s32.totalorder %s1508_s18, %s1116_s19  ;;  %s1120_s22 = sshll.u32 %s1203_s16, 4  ;;  %s1121_s22 = int_to_ptr.vmem [resolvable:$false] %s1120_s22 }
  0x91   : > { %885 = vmatpush3.bf16.msra.mxu1 %v992_v5  ;;  %s1122_s25 = scalar_lea.vmem %s1121_s22, 256  ;;  %p1123_p1 = scmp.lt.s32.totalorder %s1508_s18, %s1121_s22 }
  0x92   : > { %886 = vmatprep.subr.bf16.mxu1 %v1198_v0  ;;  %895 = vmatpush3.bf16.msra.mxu0 %v995_v9  ;;  %p1118_p7 = pnand %p1117_p3, %p1406_p5  ;;  %p1124_p2 = scmp.lt.s32.totalorder %s1122_s25, %s1116_s19 }
  0x93   : > { %896 = vmatprep.subr.bf16.mxu0 %v1198_v0  ;;  %s1506_s21 = scalar_lea.hbm %s1583_s17, %s859_s20 }
  0x94   : > { %p1119_p12 = pneg %p1118_p7  ;;  %p1125_p4 = por %p1124_p2, %p1123_p1 }
  0x95   : > { %887 = vmatpush3.bf16.msra.mxu1 %v993_v6 }
  0x96   : > { %897 = vmatpush3.bf16.msra.mxu0 %v996_v20  ;;  %p1126_p0 = pnand %p1125_p4, %p1119_p12 }
  0x97   : > { %898 = vmatprep.subr.bf16.mxu0 %v1198_v0 }
  0x9a   : > { %899 = vmatpush3.bf16.msra.mxu0 %v997_v21 }
 0x10f   : > { %v565_v22 = vpop.permute.xlu0 %564 }
 0x110   : > { %vm566_vm4 = vcmp.eq.s32.totalorder %v565_v22, 1 }
 0x111   : > { %v571_v29 = vsel %vm566_vm4, %v851_v25, %v850_v24 }
 0x15f   : > { %v462_v13 = vpop.f32.mrb[0].mxu0 }
 0x160   : > { %v463_v14 = vadd.f32 %v841_v12, %v462_v13  ;;  %v878_v15 = vpop.f32.mrb[1].mxu0 }
 0x161   : > { %v465_v16 = vpop.f32.mrb[2].mxu0 }
 0x162   : > { %v468_v17 = vmax.f32 %v463_v14, 0.0  ;;  %v879_v18 = vpop.f32.mrb[3].mxu0 }
 0x164   : > { %v469_v19 = vpack.c.bf16 %v468_v17, %v468_v17 }
 0x166   : > { %889 = vmatmul.mubr.msk.bf16.vlgmr.msra.gmra.mrb[0].mxu1 %vm509_vm3, %v469_v19 }
 0x239   : > { %v547_v26 = vpop.f32.mrb[0].mxu1 }
 0x23a   : > { %v548_v27 = vadd.f32 %v844_v23, %v547_v26  ;;  %v890_v28 = vpop.f32.mrb[1].mxu1 }
 0x23b   : > { %v550_v30 = vpop.f32.mrb[2].mxu1 }
 0x23c   : > { %v553_v31 = vmax.f32 %v548_v27, 0.0  ;;  %v891_v32 = vpop.f32.mrb[3].mxu1 }
 0x23e   : > { %v572_v33 = vadd.f32 %v571_v29, %v553_v31 }
 0x240   : > { %v573_v34 = vpack.c.bf16 %v572_v33, %v572_v33 }
 0x242   : > { %901 = vmatmul.mubr.msk.bf16.vlgmr.msra.gmra.mrb[4].mxu0 %vm509_vm3, %v573_v34 }
 0x315   : > { %v650_v36 = vpop.f32.mrb[4].mxu0 }
 0x316   : > { %v651_v37 = vadd.f32 %v852_v35, %v650_v36  ;;  %v902_v38 = vpop.f32.mrb[5].mxu0 }
 0x317   : > { %v653_v39 = vpop.f32.mrb[6].mxu0 }
 0x318   : > { %v658_v40 = vsub.f32 0.0, %v651_v37  ;;  %v903_v41 = vpop.f32.mrb[7].mxu0  ;;  %v656_v43 = vmul.f32 1.442695, %v651_v37  ;;  %v667_v46 = vmul.f32 %v651_v37, %v651_v37 }
 0x31a   : > { %v659_v42 = vmul.f32 1.442695, %v658_v40 }
 0x31c   : > { %998 = vpow2.f32 %v659_v42 }
 0x31d   : > { %1000 = vpow2.f32 %v656_v43 }
 0x326   : > { %v999_v44 = vpop.eup %998 }
 0x327   : > { %669 = vrot.lane.b32.xlu0 %v999_v44, %s1201_s29  ;;  %v1001_v45 = vpop.eup %1000  ;;  %v661_v56 = vsub.f32 0.0, %v999_v44 }
 0x32b   : > { %663 = vrot.lane.b32.xlu0 %v651_v37, %s1202_s26 }
 0x32f   : > { %683 = vrot.lane.b32.xlu0 %v1001_v45, %s1201_s29 }
 0x333   : > { %686 = vrot.lane.b32.xlu0 %v651_v37, %s1201_s29 }
 0x399   : > { %v670_v47 = vpop.permute.xlu0 %669 }
 0x39a   : > { %v672_v48 = vmul.f32 %v670_v47, %v667_v46 }
 0x39c   : > { %674 = vrot.lane.b32.xlu1 %v672_v48, %s1202_s26 }
 0x39d   : > { %v664_v54 = vpop.permute.xlu0 %663 }
 0x39e   : > { %v666_v58 = vmul.f32 %v664_v54, %v661_v56 }
 0x3a1   : > { %v684_v55 = vpop.permute.xlu0 %683 }
 0x3a2   : > { %v693_v59 = vsel %vm424_vm1, %v666_v58, %v684_v55 }
 0x3a5   : > { %v687_v57 = vpop.permute.xlu0 %686 }
 0x3a6   : > { %v695_v60 = vsel %vm694_vm5, %v693_v59, %v687_v57 }
 0x40e   : > { %v675_v49 = vpop.permute.xlu1 %674 }
 0x40f   : > { %v677_v50 = vsel %vm424_vm1, %v675_v49, 0.0 }
 0x410   : > { %678 = vadd.xlane.f32.xlu1 %v677_v50 }
 0x49d   : > { %v679_v51 = vpop.xlane.xlu1 %678 }
 0x49e   : > { %v680_v52 = vmul.f32 0.5, %v679_v51 }
 0x4a0   : > { %v681_v53 = vsub.f32 %v651_v37, %v680_v52 }
 0x4a2   : > { %690 = vrot.lane.b32.xlu0 %v681_v53, %s1201_s29 }
 0x514   : > { %v691_v61 = vpop.permute.xlu0 %690 }
 0x515   : > { %v697_v62 = vsel %vm696_vm6, %v695_v60, %v691_v61 }
 0x516   : > { %v699_v63 = vsel %vm698_vm7, %v697_v62, 0.0 }
 0x517   : > { %700 = vst [vmem:[%s402_s30] sm:$0xff] %v699_v63 }
 0x518   : > { %1129 = shalt.err (!%p1126_p0)
}
 0x519   : > { %s1130_s9 = scalar_lea.hbm %s1506_s21, 128  ;;  %s1134_s23 = scalar_lea.hbm %s1583_s17, 256 }
 0x51a   : > { %p1131_p9 = scmp.ne.s32.totalorder %s1506_s21, %s1130_s9  ;;  %p1135_p13 = scmp.lt.u32.totalorder %s1506_s21, %s1583_s17 }
 0x51b   : > { %p1136_p6 = scmp.lt.u32.totalorder %s1134_s23, %s1130_s9  ;;  %p1138_p3 = scmp.lt.u32.totalorder %s1130_s9, %s1506_s21 }
 0x51c   : > { %p1132_p8 = pnand %p1131_p9, %p1406_p5 }
 0x51d   : > { %p1137_p10 = por %p1136_p6, %p1135_p13 }
 0x51e   : > { %p1133_p11 = pneg %p1132_p8 }
 0x51f   : > { %p1139_p7 = por %p1138_p3, %p1137_p10 }
 0x521   : > { %p1140_p12 = pnand %p1139_p7, %p1133_p11 }
 0x523   : > { %1143 = shalt.err (!%p1140_p12)
}
 0x524   : > { %918 = dma.vmem_to_hbm [thread:$0]  (%p1406_p5), %s1508_s18, 128, %s1506_s21, %s702_s13  }
 0x525 PF: > { %s1584_s24 = sld [smem:[#allocation15_spill]]  ;;  %s1585_s15 = sld [smem:[#allocation16_spill]] }
 0x526   : > { %p1587_p2 = scmp.ge.s32.totalorder %s1190_s12, 2 }
 0x52b   : > { %s727_s19 = sand.u32 1, %s1584_s24   ;;  %p1586_p1 = scmp.ne.s32.totalorder %s1585_s15, 0 }
 0x52c   : > { %s728_s16 = scalar_lea.sflag [#allocation4], %s727_s19 }
 0x52d   : > { %p935_p4 = pnand %p1587_p2, %p1586_p1 }
 0x52f   : > { %1173 = dma.done.wait (!%p935_p4), %s728_s16, 128  }
 0x530   : > { %1175 = vsyncadd (!%p935_p4), %s728_s16, 4294967168  ;;  %p24_p0 = scmp.ge.s32.totalorder %s1392_s14, 4   ;;  %s1588_s30 = smov %s1182_s10 }
 0x531   : > { %s1589_s10 = smov %s1186_s11  ;;  %s1590_s11 = smov %s1402_s27 }
 0x532   : > { %s1591_s12 = smov %s1392_s14  ;;  %26 = sbr.rel (!%p24_p0) target bundleno = 9 (0x9), region = 116 }
 0x539   :  { %733 = vsyncpa [#allocation3], 1 }
 0x53a   :  { %735 = vsyncpa [#allocation3 + $0x1], 1 }
 0x53b   :  { %736 = vsyncpa [#allocation6], 1 }
 0x53c   :  { %737 = vsyncpa [#allocation9], 1 }
 0x53d   :  { %738 = vsyncpa [#allocation4], 1 }
 0x53e   :  { %740 = vsyncpa [#allocation4 + $0x1], 1 }

// kernel: tpu_custom_call.1
= control target key start
LH: loop header
LB: loop body
LE: loop exit
PB: predicated region body
PF: predicated region fallthrough
CT: control target
= control target key end

     0   :  { %s1550_s0 = inlined_call_operand.hbm [shape: bf16[16,16], index: 0, kind: input, shape index: {}]   ;;  %s1551_s1 = inlined_call_operand.vmem [shape: s32[16,1], index: 1, kind: input, shape index: {}]   ;;  %s1552_s2 = inlined_call_operand.hbm [shape: bf16[16,64], index: 2, kind: input, shape index: {}]   ;;  %s1553_s3 = inlined_call_operand.hbm [shape: f32[1,64], index: 3, kind: input, shape index: {}]   ;;  %s1554_s4 = inlined_call_operand.vmem [shape: bf16[64,64], index: 4, kind: input, shape index: {}]   ;;  %s1555_s5 = inlined_call_operand.vmem [shape: f32[1,64], index: 5, kind: input, shape index: {}]   ;;  %s1556_s6 = inlined_call_operand.vmem [shape: f32[2,64], index: 6, kind: input, shape index: {}]   ;;  %s1557_s7 = inlined_call_operand.hbm [shape: bf16[64,128], index: 7, kind: input, shape index: {}]   ;;  %s1558_s8 = inlined_call_operand.vmem [shape: f32[1,128], index: 8, kind: input, shape index: {}]   ;;  %s1559_s9 = inlined_call_operand.hbm [shape: f32[16,128], index: 9, kind: output, shape index: {}]  }
   0x1   :  { %1566 = sst [smem:[#allocation17_spill]] %s1559_s9 }
   0x2   :  { %14 = vsyncpa [#allocation3], 0 }
   0x3   :  { %16 = vsyncpa [#allocation3 + $0x1], 0 }
   0x4   :  { %17 = vsyncpa [#allocation6], 0 }
   0x5   :  { %18 = vsyncpa [#allocation9], 0 }
   0x6   :  { %19 = vsyncpa [#allocation4], 0 }
   0x7   :  { %21 = vsyncpa [#allocation4 + $0x1], 0  ;;  %s1254_s30 = smov 0   ;;  %s1256_s10 = smov 0  }
   0x8   :  { %s1258_s11 = smov 0   ;;  %s1260_s12 = smov 0  }
   0x9 LB: > { %1567 = sst [smem:[#allocation15_spill]] %s1178_s30  ;;  %s1275_s13 = sadd.s32 4294967295, %s1190_s12   ;;  %s1190_s12 = sphi %s1260_s12, %s1591_s12   ;;  %s1186_s11 = sphi %s1258_s11, %s1590_s11   ;;  %s1182_s10 = sphi %s1256_s10, %s1589_s10   ;;  %s1178_s30 = sphi %s1254_s30, %s1588_s30  }
   0xa   : > { %s826_s14 = sadd.s32 4294967294, %s1190_s12   ;;  %p47_p0 = scmp.ne.s32.totalorder %s1182_s10, %s1178_s30 }
   0xb   : > { %p1560_p1 = scmp.eq.s32.totalorder %s1275_s13, 0  ;;  %p250_p3 = scmp.eq.s32.totalorder %s826_s14, 1 }
   0xc   : > { %p827_p5 = scmp.ge.s32.totalorder %s1190_s12, 1  ;;  %p257_p7 = scmp.lt.s32.totalorder %s1190_s12, 3 }
   0xd   : > { %p1284_p4 = por %p1560_p1, %p47_p0  ;;  %p1289_p6 = por %p250_p3, %p47_p0 }
   0xe   : > { %p1294_p8 = pnand %p827_p5, %p257_p7  ;;  %s1192_s18 = smov [#allocation5]  }
   0xf   : > { %s1568_s15 = scalar_select %p1284_p4, 1, 0 }
  0x10   : > { %s1569_s16 = scalar_select %p1289_p6, 1, 0 }
  0x11   : > { %s1571_s17 = scalar_select %p1294_p8, 1, 0 }
  0x12   : > { %1570 = sst [smem:[#allocation16_spill]] %s1569_s16  ;;  %s269_s19 = sshll.u32 %s1192_s18, 4  ;;  %s1298_s19 = int_to_ptr.vmem [resolvable:$true] %s269_s19 }
  0x13   : > { %p920_p9 = pneg %p1294_p8  ;;  %s1193_s21 = smov [#allocation7]  }
  0x14   : > { %s283_s22 = sshll.u32 %s1193_s21, 4  ;;  %s1194_s23 = smov [#allocation8]   ;;  %s1309_s22 = int_to_ptr.vmem [resolvable:$true] %s283_s22 }
  0x15   : > { %p1305_p11 = pnand %p920_p9, %p1560_p1  ;;  %s1311_s24 = sshll.u32 %s1194_s23, 4  ;;  %s303_s24 = int_to_ptr.vmem [resolvable:$true] %s1311_s24 }
  0x16   : > { %s1002_s27 = scalar_lea.hbm %s1552_s2, 128 }
  0x17   : > { %p1003_p12 = scmp.ne.s32.totalorder %s1552_s2, %s1002_s27  ;;  %p1321_p13 = pneg %p1305_p11 }
  0x18   : > { %p1009_p5 = scmp.lt.u32.totalorder %s1002_s27, %s1552_s2 }
  0x19   : > { %p1005_p0 = pnand %p1321_p13, %p1003_p12 }
  0x1b   : > { %p1006_p3 = pneg %p1005_p0 }
  0x1d   : > { %p1011_p7 = pnand %p1009_p5, %p1006_p3 }
  0x1f   : > { %1014 = shalt.err (!%p1011_p7)
}
  0x20   : > { %s1015_s23 = scalar_lea.vmem %s1298_s19, 128  ;;  %p1023_p2 = scmp.lt.s32.totalorder %s1298_s19, %s1298_s19 }
  0x21   : > { %p1016_p9 = scmp.ne.s32.totalorder %s1298_s19, %s1015_s23  ;;  %p1024_p6 = scmp.lt.s32.totalorder %s1015_s23, %s1015_s23 }
  0x23   : > { %p1018_p10 = pnand %p1016_p9, %p1321_p13  ;;  %p1025_p12 = por %p1024_p6, %p1023_p2 }
  0x25   : > { %p1019_p1 = pneg %p1018_p10 }
  0x27   : > { %p1026_p0 = pnand %p1025_p12, %p1019_p1 }
  0x29   : > { %1029 = shalt.err (!%p1026_p0)
}
  0x2a   : > { %s1195_s25 = smov 64   ;;  %s1196_s26 = smov 4  }
  0x2b   : > { %923 = dma.hbm_to_vmem [thread:$0]  (!%p1305_p11), %s1552_s2, 128, %s1298_s19, [#allocation6], %s1195_s25, %s1195_s25, %s1196_s26  }
  0x2c   : > { %s1030_s21 = scalar_lea.hbm %s1553_s3, 16 }
  0x2d   : > { %p1031_p1 = scmp.ne.s32.totalorder %s1553_s3, %s1030_s21  ;;  %p1037_p10 = scmp.lt.u32.totalorder %s1030_s21, %s1553_s3 }
  0x2f   : > { %p1033_p2 = pnand %p1031_p1, %p1321_p13 }
  0x31   : > { %p1034_p6 = pneg %p1033_p2 }
  0x33   : > { %p1039_p3 = pnand %p1037_p10, %p1034_p6 }
  0x35   : > { %1042 = shalt.err (!%p1039_p3)
}
  0x36   : > { %s1043_s19 = scalar_lea.vmem %s1309_s22, 16  ;;  %s1050_s16 = scalar_lea.vmem %s1309_s22, 32 }
  0x37   : > { %p1044_p5 = scmp.ne.s32.totalorder %s1309_s22, %s1043_s19  ;;  %p1051_p12 = scmp.lt.s32.totalorder %s1309_s22, %s1309_s22 }
  0x38   : > { %p1052_p0 = scmp.lt.s32.totalorder %s1050_s16, %s1043_s19 }
  0x39   : > { %p1046_p7 = pnand %p1044_p5, %p1321_p13 }
  0x3a   : > { %p1053_p1 = por %p1052_p0, %p1051_p12 }
  0x3b   : > { %p1047_p9 = pneg %p1046_p7 }
  0x3d   : > { %p1054_p2 = pnand %p1053_p1, %p1047_p9 }
  0x3f   : > { %1057 = shalt.err (!%p1054_p2)
}
  0x40   : > { %926 = dma.hbm_to_vmem [thread:$0]  (!%p1305_p11), %s1553_s3, 16, %s1309_s22, [#allocation6]  }
  0x41   : > { %s1058_s29 = scalar_lea.hbm %s1557_s7, 512 }
  0x42   : > { %p1059_p6 = scmp.ne.s32.totalorder %s1557_s7, %s1058_s29  ;;  %p1065_p5 = scmp.lt.u32.totalorder %s1058_s29, %s1557_s7 }
  0x44   : > { %p1061_p10 = pnand %p1059_p6, %p1321_p13 }
  0x46   : > { %p1062_p3 = pneg %p1061_p10 }
  0x48   : > { %p1067_p7 = pnand %p1065_p5, %p1062_p3 }
  0x4a   : > { %1070 = shalt.err (!%p1067_p7)
}
  0x4b   : > { %s1071_s16 = scalar_lea.vmem %s303_s24, 512  ;;  %p1079_p1 = scmp.lt.s32.totalorder %s303_s24, %s303_s24 }
  0x4c   : > { %p1072_p9 = scmp.ne.s32.totalorder %s303_s24, %s1071_s16  ;;  %p1080_p2 = scmp.lt.s32.totalorder %s1071_s16, %s1071_s16 }
  0x4e   : > { %p1074_p12 = pnand %p1072_p9, %p1321_p13  ;;  %p1081_p4 = por %p1080_p2, %p1079_p1 }
  0x50   : > { %p1075_p0 = pneg %p1074_p12 }
  0x52   : > { %p1082_p8 = pnand %p1081_p4, %p1075_p0 }
  0x54   : > { %1085 = shalt.err (!%p1082_p8)
}
  0x55   : > { %929 = dma.hbm_to_vmem [thread:$0]  (!%p1305_p11), %s1557_s7, 512, %s303_s24, [#allocation9], %s1195_s25, %s1195_s25, %s1196_s26  }
  0x56   : > { %s1392_s14 = sadd.s32 1, %s1190_s12   ;;  %s34_s30 = sadd.s32 1, %s1186_s11 }
  0x57   : > { %s31_s20 = ssub.s32 %s1190_s12, %s1392_s14  ;;  %p41_p8 = scmp.ne.s32.totalorder %s1186_s11, %s1182_s10 }
  0x58   : > { %p32_p4 = scmp.eq.s32.totalorder %s31_s20, 0  ;;  %p42_p13 = scmp.eq.s32.totalorder %s1190_s12, 0 }
  0x59   : > { %p941_p6 = scmp.lt.s32.totalorder %s1190_s12, 2  ;;  %p1574_p3 = scmp.eq.s32.totalorder %s1275_s13, 1 }
  0x5a   : > { %s1402_s27 = scalar_select %p32_p4, %s1186_s11, %s34_s30  }
  0x5b   : > { %p43_p10 = por %p42_p13, %p41_p8  ;;  %p1406_p5 = por %p1574_p3, %p41_p8 }
  0x5c   : > { %s319_s29 = sand.u32 1, %s1186_s11   ;;  %s833_s18 = sshll.u32 %s1190_s12, 6 }
  0x5d   : > { %s832_s24 = sshll.u32 %s319_s29, 2  ;;  %s1415_s21 = scalar_lea.hbm %s1550_s0, %s833_s18 }
  0x5e   : > { %s323_s23 = scalar_lea.vmem [#allocation2], %s832_s24  ;;  %p1417_p11 = pnand %p941_p6, %p43_p10 }
  0x5f   : > { %s330_s19 = sshll.u32 %s323_s23, 4  ;;  %s320_s22 = scalar_lea.sflag [#allocation3], %s319_s29  ;;  %s1421_s19 = int_to_ptr.vmem [resolvable:$true] %s330_s19 }
  0x60   : > { %s1086_s9 = scalar_lea.hbm %s1415_s21, 64  ;;  %p1088_p9 = pneg %p1417_p11 }
  0x61   : > { %p1087_p7 = scmp.ne.s32.totalorder %s1415_s21, %s1086_s9  ;;  %s1091_s18 = scalar_lea.hbm %s1550_s0, 128 }
  0x62   : > { %p1092_p1 = scmp.lt.u32.totalorder %s1415_s21, %s1550_s0  ;;  %p1093_p2 = scmp.lt.u32.totalorder %s1091_s18, %s1086_s9 }
  0x63   : > { %p1089_p12 = pnand %p1088_p9, %p1087_p7  ;;  %p1095_p8 = scmp.lt.u32.totalorder %s1086_s9, %s1415_s21 }
  0x64   : > { %p1094_p4 = por %p1093_p2, %p1092_p1 }
  0x65   : > { %p1090_p0 = pneg %p1089_p12 }
  0x66   : > { %p1096_p13 = por %p1095_p8, %p1094_p4 }
  0x68   : > { %p1097_p6 = pnand %p1096_p13, %p1090_p0 }
  0x6a   : > { %1100 = shalt.err (!%p1097_p6)
}
  0x6b   : > { %s1101_s29 = scalar_lea.vmem %s1421_s19, 64  ;;  %s1197_s26 = smov [#allocation2]  }
  0x6c   : > { %p1102_p10 = scmp.ne.s32.totalorder %s1421_s19, %s1101_s29  ;;  %s1106_s23 = sshll.u32 %s1197_s26, 4  ;;  %s1107_s23 = int_to_ptr.vmem [resolvable:$false] %s1106_s23 }
  0x6d   : > { %s1108_s20 = scalar_lea.vmem %s1107_s23, 128  ;;  %p1109_p12 = scmp.lt.s32.totalorder %s1421_s19, %s1107_s23 }
  0x6e   : > { %p1104_p3 = pnand %p1102_p10, %p1088_p9  ;;  %p1110_p1 = scmp.lt.s32.totalorder %s1108_s20, %s1101_s29 }
  0x70   : > { %p1105_p7 = pneg %p1104_p3  ;;  %p1111_p2 = por %p1110_p1, %p1109_p12 }
  0x72   : > { %p1112_p4 = pnand %p1111_p2, %p1105_p7 }
  0x74   : > { %1115 = shalt.err (!%p1112_p4)
}
  0x75   : > { %933 = dma.hbm_to_vmem [thread:$0]  (!%p1417_p11), %s1415_s21, 64, %s1421_s19, %s320_s22  }
  0x76   : > { %p1577_p0 = scmp.ne.s32.totalorder %s1571_s17, 0 }
  0x77   : > { %s1451_s9 = sand.u32 (!%p1577_p0), 1, %s1182_s10   ;;  %p1578_p9 = scmp.ne.s32.totalorder (!%p1577_p0), %s1568_s15, 0 }
  0x78   : > { %346 = sbr.rel (%p1577_p0) target bundleno = 1317 (0x525), region = 56  ;;  %s835_s30 = sshll.u32 (!%p1577_p0), %s1451_s9, 2 }
  0x79   : > { %s349_s18 = scalar_lea.sflag (!%p1577_p0), [#allocation3], %s1451_s9  ;;  %s352_s24 = scalar_lea.vmem (!%p1577_p0), [#allocation2], %s835_s30 }
  0x7f   : > { %1161 = dma.done.wait (%p1578_p9), %s349_s18, 64  }
  0x80   : > { %1163 = vsyncadd (%p1578_p9), %s349_s18, 4294967232  ;;  %p1579_p8 = scmp.eq.s32.totalorder %s1275_s13, 0 }
  0x82   : > { %1165 = dma.done.wait (%p1579_p8), [#allocation6], 144   ;;  %p1580_p11 = pmov %p1579_p8 }
  0x83   : > { %p1581_p13 = pmov %p1579_p8 }
  0x84   : > { %1167 = vsyncadd (%p1580_p11), [#allocation6], 4294967152 }
  0x85   : > { %1169 = dma.done.wait (%p1581_p13), [#allocation9], 512   ;;  %p1582_p6 = pmov %p1579_p8 }
  0x86   : > { %v1198_v0 = vmov 0.0   ;;  %vm1199_vm0 = vmmov 0   ;;  %v989_v1 = vld [vmem:[#allocation5] sm:$0xff]   ;;  %v408_v2 = vld [vmem:[%s352_s24] sm:$0xf]  ;;  %vm424_vm1 = vcmask 130048  }
  0x87   : > { %1171 = vsyncadd (%p1582_p6), [#allocation9], 4294966784  ;;  %874 = vmatprep.subr.bf16.mxu0 %v1198_v0  ;;  %876 = vmatprep.mubr.msk.bf16.mxu0 %vm1199_vm0, %v1198_v0  ;;  %v990_v3 = vld [vmem:[%s1554_s4] sm:$0xff]   ;;  %v991_v4 = vld [vmem:[%s1554_s4 + $0x8] sm:$0xff]   ;;  %p403_p10 = scmp.lt.s32.totalorder %s1275_s13, 1  ;;  %v1200_v8 = vmov 0  }
  0x88   : > { %880 = vmatprep.subr.bf16.mxu1 %v1198_v0  ;;  %888 = vmatprep.mubr.msk.bf16.mxu1 %vm1199_vm0, %v1198_v0  ;;  %v992_v5 = vld [vmem:[%s1554_s4 + $0x10] sm:$0xff]   ;;  %v993_v6 = vld [vmem:[%s1554_s4 + $0x18] sm:$0xff]   ;;  %vm509_vm3 = vcmask 523264   ;;  %v996_v20 = vld [vmem:[#allocation8 + $0x10] sm:$0xff]   ;;  %s1201_s29 = smov 16   ;;  %vm694_vm5 = vcmask 261120  }
  0x89   : > { %875 = vmatpush3.bf16.msra.mxu0 %v989_v1  ;;  %881 = vmatpush3.bf16.msra.mxu1 %v990_v3  ;;  %v994_v7 = vld [vmem:[#allocation8] sm:$0xff]   ;;  %s404_s26 = scalar_select %p403_p10, %s1275_s13, 1  ;;  %v995_v9 = vld [vmem:[#allocation8 + $0x8] sm:$0xff]   ;;  %v841_v12 = vld [vmem:[#allocation7] ss:$0 sm:$0xff]  ;;  %vm696_vm6 = vcmask 392192  }
  0x8a   : > { %892 = vmatprep.subr.bf16.mxu0 %v1198_v0  ;;  %882 = vmatprep.subr.bf16.mxu1 %v1198_v0  ;;  %v997_v21 = vld [vmem:[#allocation8 + $0x18] sm:$0xff]   ;;  %v844_v23 = vld [vmem:[%s1555_s5] ss:$0 sm:$0xff]  ;;  %v851_v25 = vld [vmem:[%s1556_s6 + $0x1] ss:$0 sm:$0xff]  ;;  %s859_s20 = sshll.u32 %s1275_s13, 7 }
  0x8b   : > { %988 = vset.pattern.permute.xlu0 %v1200_v8  ;;  %s840_s23 = sshll.u32 %s404_s26, 3  ;;  %v850_v24 = vld [vmem:[%s1556_s6] ss:$0 sm:$0xff]  ;;  %s1202_s26 = smov 112   ;;  %vm698_vm7 = vcmask 400384  }
  0x8c   : > { %877 = vmatmul.mubr.msk.bf16.vlgmr.msra.gmra.mrb[0].mxu0 %vm424_vm1, %v408_v2  ;;  %s406_s18 = scalar_lea.vmem %s1551_s1, %s840_s23  ;;  %v852_v35 = vld [vmem:[%s1558_s8] ss:$0 sm:$0xff]  ;;  %s839_s23 = sshll.u32 %s1451_s9, 3 }
  0x8d   : > { %900 = vmatprep.mubr.msk.bf16.mxu0 %vm1199_vm0, %v1198_v0  ;;  %883 = vmatpush3.bf16.msra.mxu1 %v991_v4  ;;  %v554_v10 = vld [vmem:[%s406_s18] sm:$0xff]  ;;  %s402_s30 = scalar_lea.vmem [#allocation10], %s839_s23  ;;  %s1583_s17 = sld [smem:[#allocation17_spill]] }
  0x8e   : > { %884 = vmatprep.subr.bf16.mxu1 %v1198_v0  ;;  %893 = vmatpush3.bf16.msra.mxu0 %v994_v7  ;;  %vm560_vm2 = vcmp.eq.s32.totalorder %v554_v10, 1  ;;  %s715_s18 = sshll.u32 %s402_s30, 4  ;;  %s702_s13 = scalar_lea.sflag [#allocation4], %s1451_s9  ;;  %s1508_s18 = int_to_ptr.vmem [resolvable:$true] %s715_s18 }
  0x8f   : > { %894 = vmatprep.subr.bf16.mxu0 %v1198_v0  ;;  %v562_v11 = vsel %vm560_vm2, 1, %v1200_v8  ;;  %s1116_s19 = scalar_lea.vmem %s1508_s18, 128  ;;  %s1203_s16 = smov [#allocation10]  }
  0x90   : > { %564 = vperm.xlu0 %988, %v562_v11   ;;  %p1117_p3 = scmp.ne.s32.totalorder %s1508_s18, %s1116_s19  ;;  %s1120_s22 = sshll.u32 %s1203_s16, 4  ;;  %s1121_s22 = int_to_ptr.vmem [resolvable:$false] %s1120_s22 }
  0x91   : > { %885 = vmatpush3.bf16.msra.mxu1 %v992_v5  ;;  %s1122_s25 = scalar_lea.vmem %s1121_s22, 256  ;;  %p1123_p1 = scmp.lt.s32.totalorder %s1508_s18, %s1121_s22 }
  0x92   : > { %886 = vmatprep.subr.bf16.mxu1 %v1198_v0  ;;  %895 = vmatpush3.bf16.msra.mxu0 %v995_v9  ;;  %p1118_p7 = pnand %p1117_p3, %p1406_p5  ;;  %p1124_p2 = scmp.lt.s32.totalorder %s1122_s25, %s1116_s19 }
  0x93   : > { %896 = vmatprep.subr.bf16.mxu0 %v1198_v0  ;;  %s1506_s21 = scalar_lea.hbm %s1583_s17, %s859_s20 }
  0x94   : > { %p1119_p12 = pneg %p1118_p7  ;;  %p1125_p4 = por %p1124_p2, %p1123_p1 }
  0x95   : > { %887 = vmatpush3.bf16.msra.mxu1 %v993_v6 }
  0x96   : > { %897 = vmatpush3.bf16.msra.mxu0 %v996_v20  ;;  %p1126_p0 = pnand %p1125_p4, %p1119_p12 }
  0x97   : > { %898 = vmatprep.subr.bf16.mxu0 %v1198_v0 }
  0x9a   : > { %899 = vmatpush3.bf16.msra.mxu0 %v997_v21 }
 0x10f   : > { %v565_v22 = vpop.permute.xlu0 %564 }
 0x110   : > { %vm566_vm4 = vcmp.eq.s32.totalorder %v565_v22, 1 }
 0x111   : > { %v571_v29 = vsel %vm566_vm4, %v851_v25, %v850_v24 }
 0x15f   : > { %v462_v13 = vpop.f32.mrb[0].mxu0 }
 0x160   : > { %v463_v14 = vadd.f32 %v841_v12, %v462_v13  ;;  %v878_v15 = vpop.f32.mrb[1].mxu0 }
 0x161   : > { %v465_v16 = vpop.f32.mrb[2].mxu0 }
 0x162   : > { %v468_v17 = vmax.f32 %v463_v14, 0.0  ;;  %v879_v18 = vpop.f32.mrb[3].mxu0 }
 0x164   : > { %v469_v19 = vpack.c.bf16 %v468_v17, %v468_v17 }
 0x166   : > { %889 = vmatmul.mubr.msk.bf16.vlgmr.msra.gmra.mrb[0].mxu1 %vm509_vm3, %v469_v19 }
 0x239   : > { %v547_v26 = vpop.f32.mrb[0].mxu1 }
 0x23a   : > { %v548_v27 = vadd.f32 %v844_v23, %v547_v26  ;;  %v890_v28 = vpop.f32.mrb[1].mxu1 }
 0x23b   : > { %v550_v30 = vpop.f32.mrb[2].mxu1 }
 0x23c   : > { %v553_v31 = vmax.f32 %v548_v27, 0.0  ;;  %v891_v32 = vpop.f32.mrb[3].mxu1 }
 0x23e   : > { %v572_v33 = vadd.f32 %v571_v29, %v553_v31 }
 0x240   : > { %v573_v34 = vpack.c.bf16 %v572_v33, %v572_v33 }
 0x242   : > { %901 = vmatmul.mubr.msk.bf16.vlgmr.msra.gmra.mrb[4].mxu0 %vm509_vm3, %v573_v34 }
 0x315   : > { %v650_v36 = vpop.f32.mrb[4].mxu0 }
 0x316   : > { %v651_v37 = vadd.f32 %v852_v35, %v650_v36  ;;  %v902_v38 = vpop.f32.mrb[5].mxu0 }
 0x317   : > { %v653_v39 = vpop.f32.mrb[6].mxu0 }
 0x318   : > { %v658_v40 = vsub.f32 0.0, %v651_v37  ;;  %v903_v41 = vpop.f32.mrb[7].mxu0  ;;  %v656_v43 = vmul.f32 1.442695, %v651_v37  ;;  %v667_v46 = vmul.f32 %v651_v37, %v651_v37 }
 0x31a   : > { %v659_v42 = vmul.f32 1.442695, %v658_v40 }
 0x31c   : > { %998 = vpow2.f32 %v659_v42 }
 0x31d   : > { %1000 = vpow2.f32 %v656_v43 }
 0x326   : > { %v999_v44 = vpop.eup %998 }
 0x327   : > { %669 = vrot.lane.b32.xlu0 %v999_v44, %s1201_s29  ;;  %v1001_v45 = vpop.eup %1000  ;;  %v661_v56 = vsub.f32 0.0, %v999_v44 }
 0x32b   : > { %663 = vrot.lane.b32.xlu0 %v651_v37, %s1202_s26 }
 0x32f   : > { %683 = vrot.lane.b32.xlu0 %v1001_v45, %s1201_s29 }
 0x333   : > { %686 = vrot.lane.b32.xlu0 %v651_v37, %s1201_s29 }
 0x399   : > { %v670_v47 = vpop.permute.xlu0 %669 }
 0x39a   : > { %v672_v48 = vmul.f32 %v670_v47, %v667_v46 }
 0x39c   : > { %674 = vrot.lane.b32.xlu1 %v672_v48, %s1202_s26 }
 0x39d   : > { %v664_v54 = vpop.permute.xlu0 %663 }
 0x39e   : > { %v666_v58 = vmul.f32 %v664_v54, %v661_v56 }
 0x3a1   : > { %v684_v55 = vpop.permute.xlu0 %683 }
 0x3a2   : > { %v693_v59 = vsel %vm424_vm1, %v666_v58, %v684_v55 }
 0x3a5   : > { %v687_v57 = vpop.permute.xlu0 %686 }
 0x3a6   : > { %v695_v60 = vsel %vm694_vm5, %v693_v59, %v687_v57 }
 0x40e   : > { %v675_v49 = vpop.permute.xlu1 %674 }
 0x40f   : > { %v677_v50 = vsel %vm424_vm1, %v675_v49, 0.0 }
 0x410   : > { %678 = vadd.xlane.f32.xlu1 %v677_v50 }
 0x49d   : > { %v679_v51 = vpop.xlane.xlu1 %678 }
 0x49e   : > { %v680_v52 = vmul.f32 0.5, %v679_v51 }
 0x4a0   : > { %v681_v53 = vsub.f32 %v651_v37, %v680_v52 }
 0x4a2   : > { %690 = vrot.lane.b32.xlu0 %v681_v53, %s1201_s29 }
 0x514   : > { %v691_v61 = vpop.permute.xlu0 %690 }
 0x515   : > { %v697_v62 = vsel %vm696_vm6, %v695_v60, %v691_v61 }
 0x516   : > { %v699_v63 = vsel %vm698_vm7, %v697_v62, 0.0 }
 0x517   : > { %700 = vst [vmem:[%s402_s30] sm:$0xff] %v699_v63 }
 0x518   : > { %1129 = shalt.err (!%p1126_p0)
}
 0x519   : > { %s1130_s9 = scalar_lea.hbm %s1506_s21, 128  ;;  %s1134_s23 = scalar_lea.hbm %s1583_s17, 256 }
 0x51a   : > { %p1131_p9 = scmp.ne.s32.totalorder %s1506_s21, %s1130_s9  ;;  %p1135_p13 = scmp.lt.u32.totalorder %s1506_s21, %s1583_s17 }
 0x51b   : > { %p1136_p6 = scmp.lt.u32.totalorder %s1134_s23, %s1130_s9  ;;  %p1138_p3 = scmp.lt.u32.totalorder %s1130_s9, %s1506_s21 }
 0x51c   : > { %p1132_p8 = pnand %p1131_p9, %p1406_p5 }
 0x51d   : > { %p1137_p10 = por %p1136_p6, %p1135_p13 }
 0x51e   : > { %p1133_p11 = pneg %p1132_p8 }
 0x51f   : > { %p1139_p7 = por %p1138_p3, %p1137_p10 }
 0x521   : > { %p1140_p12 = pnand %p1139_p7, %p1133_p11 }
 0x523   : > { %1143 = shalt.err (!%p1140_p12)
}
 0x524   : > { %918 = dma.vmem_to_hbm [thread:$0]  (%p1406_p5), %s1508_s18, 128, %s1506_s21, %s702_s13  }
 0x525 PF: > { %s1584_s24 = sld [smem:[#allocation15_spill]]  ;;  %s1585_s15 = sld [smem:[#allocation16_spill]] }
 0x526   : > { %p1587_p2 = scmp.ge.s32.totalorder %s1190_s12, 2 }
 0x52b   : > { %s727_s19 = sand.u32 1, %s1584_s24   ;;  %p1586_p1 = scmp.ne.s32.totalorder %s1585_s15, 0 }
 0x52c   : > { %s728_s16 = scalar_lea.sflag [#allocation4], %s727_s19 }
 0x52d   : > { %p935_p4 = pnand %p1587_p2, %p1586_p1 }
 0x52f   : > { %1173 = dma.done.wait (!%p935_p4), %s728_s16, 128  }
 0x530   : > { %1175 = vsyncadd (!%p935_p4), %s728_s16, 4294967168  ;;  %p24_p0 = scmp.ge.s32.totalorder %s1392_s14, 4   ;;  %s1588_s30 = smov %s1182_s10 }
 0x531   : > { %s1589_s10 = smov %s1186_s11  ;;  %s1590_s11 = smov %s1402_s27 }
 0x532   : > { %s1591_s12 = smov %s1392_s14  ;;  %26 = sbr.rel (!%p24_p0) target bundleno = 9 (0x9), region = 116 }
 0x539   :  { %733 = vsyncpa [#allocation3], 1 }
 0x53a   :  { %735 = vsyncpa [#allocation3 + $0x1], 1 }
 0x53b   :  { %736 = vsyncpa [#allocation6], 1 }
 0x53c   :  { %737 = vsyncpa [#allocation9], 1 }
 0x53d   :  { %738 = vsyncpa [#allocation4], 1 }
 0x53e   :  { %740 = vsyncpa [#allocation4 + $0x1], 1 }

// kernel: tpu_custom_call.1
= control target key start
LH: loop header
LB: loop body
LE: loop exit
PB: predicated region body
PF: predicated region fallthrough
CT: control target
= control target key end

     0   :  { %s1564_s0 = inlined_call_operand.hbm [shape: bf16[16,16], index: 0, kind: input, shape index: {}]   ;;  %s1565_s1 = inlined_call_operand.vmem [shape: s32[16,1], index: 1, kind: input, shape index: {}]   ;;  %s1566_s2 = inlined_call_operand.hbm [shape: bf16[16,64], index: 2, kind: input, shape index: {}]   ;;  %s1567_s3 = inlined_call_operand.hbm [shape: f32[1,64], index: 3, kind: input, shape index: {}]   ;;  %s1568_s4 = inlined_call_operand.vmem [shape: bf16[64,64], index: 4, kind: input, shape index: {}]   ;;  %s1569_s5 = inlined_call_operand.vmem [shape: f32[1,64], index: 5, kind: input, shape index: {}]   ;;  %s1570_s6 = inlined_call_operand.vmem [shape: f32[2,64], index: 6, kind: input, shape index: {}]   ;;  %s1571_s7 = inlined_call_operand.hbm [shape: bf16[64,128], index: 7, kind: input, shape index: {}]   ;;  %s1572_s8 = inlined_call_operand.vmem [shape: f32[1,128], index: 8, kind: input, shape index: {}]   ;;  %s1573_s9 = inlined_call_operand.hbm [shape: f32[16,128], index: 9, kind: output, shape index: {}]  }
   0x1   :  { %1580 = sst [smem:[#allocation17_spill]] %s1573_s9 }
   0x2   :  { %14 = vsyncpa [#allocation3], 0 }
   0x3   :  { %16 = vsyncpa [#allocation3 + $0x1], 0 }
   0x4   :  { %17 = vsyncpa [#allocation6], 0 }
   0x5   :  { %18 = vsyncpa [#allocation9], 0 }
   0x6   :  { %19 = vsyncpa [#allocation4], 0 }
   0x7   :  { %21 = vsyncpa [#allocation4 + $0x1], 0  ;;  %s1255_s30 = smov 0   ;;  %s1257_s10 = smov 0  }
   0x8   :  { %s1259_s11 = smov 0   ;;  %s1261_s12 = smov 0  }
   0x9 LB: > { %1581 = sst [smem:[#allocation15_spill]] %s1179_s30  ;;  %s1276_s13 = sadd.s32 4294967295, %s1191_s12   ;;  %s1191_s12 = sphi %s1261_s12, %s1605_s12   ;;  %s1187_s11 = sphi %s1259_s11, %s1604_s11   ;;  %s1183_s10 = sphi %s1257_s10, %s1603_s10   ;;  %s1179_s30 = sphi %s1255_s30, %s1602_s30  }
   0xa   : > { %s827_s14 = sadd.s32 4294967294, %s1191_s12   ;;  %p47_p0 = scmp.ne.s32.totalorder %s1183_s10, %s1179_s30 }
   0xb   : > { %p1574_p1 = scmp.eq.s32.totalorder %s1276_s13, 0  ;;  %p250_p3 = scmp.eq.s32.totalorder %s827_s14, 1 }
   0xc   : > { %p828_p5 = scmp.ge.s32.totalorder %s1191_s12, 1  ;;  %p257_p7 = scmp.lt.s32.totalorder %s1191_s12, 3 }
   0xd   : > { %p1285_p4 = por %p1574_p1, %p47_p0  ;;  %p1290_p6 = por %p250_p3, %p47_p0 }
   0xe   : > { %p1295_p8 = pnand %p828_p5, %p257_p7  ;;  %s1193_s18 = smov [#allocation5]  }
   0xf   : > { %s1582_s15 = scalar_select %p1285_p4, 1, 0 }
  0x10   : > { %s1583_s16 = scalar_select %p1290_p6, 1, 0 }
  0x11   : > { %s1585_s17 = scalar_select %p1295_p8, 1, 0 }
  0x12   : > { %1584 = sst [smem:[#allocation16_spill]] %s1583_s16  ;;  %s269_s19 = sshll.u32 %s1193_s18, 4  ;;  %s1299_s19 = int_to_ptr.vmem [resolvable:$true] %s269_s19 }
  0x13   : > { %p921_p9 = pneg %p1295_p8  ;;  %s1194_s21 = smov [#allocation7]  }
  0x14   : > { %s283_s22 = sshll.u32 %s1194_s21, 4  ;;  %s1195_s23 = smov [#allocation8]   ;;  %s1310_s22 = int_to_ptr.vmem [resolvable:$true] %s283_s22 }
  0x15   : > { %p1306_p11 = pnand %p921_p9, %p1574_p1  ;;  %s1312_s24 = sshll.u32 %s1195_s23, 4  ;;  %s303_s24 = int_to_ptr.vmem [resolvable:$true] %s1312_s24 }
  0x16   : > { %s1003_s27 = scalar_lea.hbm %s1566_s2, 128 }
  0x17   : > { %p1004_p12 = scmp.ne.s32.totalorder %s1566_s2, %s1003_s27  ;;  %p1322_p13 = pneg %p1306_p11 }
  0x18   : > { %p1010_p5 = scmp.lt.u32.totalorder %s1003_s27, %s1566_s2 }
  0x19   : > { %p1006_p0 = pnand %p1322_p13, %p1004_p12 }
  0x1b   : > { %p1007_p3 = pneg %p1006_p0 }
  0x1d   : > { %p1012_p7 = pnand %p1010_p5, %p1007_p3 }
  0x1f   : > { %1015 = shalt.err (!%p1012_p7)
}
  0x20   : > { %s1016_s23 = scalar_lea.vmem %s1299_s19, 128  ;;  %p1024_p2 = scmp.lt.s32.totalorder %s1299_s19, %s1299_s19 }
  0x21   : > { %p1017_p9 = scmp.ne.s32.totalorder %s1299_s19, %s1016_s23  ;;  %p1025_p6 = scmp.lt.s32.totalorder %s1016_s23, %s1016_s23 }
  0x23   : > { %p1019_p10 = pnand %p1017_p9, %p1322_p13  ;;  %p1026_p12 = por %p1025_p6, %p1024_p2 }
  0x25   : > { %p1020_p1 = pneg %p1019_p10 }
  0x27   : > { %p1027_p0 = pnand %p1026_p12, %p1020_p1 }
  0x29   : > { %1030 = shalt.err (!%p1027_p0)
}
  0x2a   : > { %s1196_s25 = smov 64   ;;  %s1197_s26 = smov 4  }
  0x2b   : > { %924 = dma.hbm_to_vmem [thread:$0]  (!%p1306_p11), %s1566_s2, 128, %s1299_s19, [#allocation6], %s1196_s25, %s1196_s25, %s1197_s26  }
  0x2c   : > { %s1031_s21 = scalar_lea.hbm %s1567_s3, 16 }
  0x2d   : > { %p1032_p1 = scmp.ne.s32.totalorder %s1567_s3, %s1031_s21  ;;  %p1038_p10 = scmp.lt.u32.totalorder %s1031_s21, %s1567_s3 }
  0x2f   : > { %p1034_p2 = pnand %p1032_p1, %p1322_p13 }
  0x31   : > { %p1035_p6 = pneg %p1034_p2 }
  0x33   : > { %p1040_p3 = pnand %p1038_p10, %p1035_p6 }
  0x35   : > { %1043 = shalt.err (!%p1040_p3)
}
  0x36   : > { %s1044_s19 = scalar_lea.vmem %s1310_s22, 16  ;;  %s1051_s16 = scalar_lea.vmem %s1310_s22, 32 }
  0x37   : > { %p1045_p5 = scmp.ne.s32.totalorder %s1310_s22, %s1044_s19  ;;  %p1052_p12 = scmp.lt.s32.totalorder %s1310_s22, %s1310_s22 }
  0x38   : > { %p1053_p0 = scmp.lt.s32.totalorder %s1051_s16, %s1044_s19 }
  0x39   : > { %p1047_p7 = pnand %p1045_p5, %p1322_p13 }
  0x3a   : > { %p1054_p1 = por %p1053_p0, %p1052_p12 }
  0x3b   : > { %p1048_p9 = pneg %p1047_p7 }
  0x3d   : > { %p1055_p2 = pnand %p1054_p1, %p1048_p9 }
  0x3f   : > { %1058 = shalt.err (!%p1055_p2)
}
  0x40   : > { %927 = dma.hbm_to_vmem [thread:$0]  (!%p1306_p11), %s1567_s3, 16, %s1310_s22, [#allocation6]  }
  0x41   : > { %s1059_s29 = scalar_lea.hbm %s1571_s7, 512 }
  0x42   : > { %p1060_p6 = scmp.ne.s32.totalorder %s1571_s7, %s1059_s29  ;;  %p1066_p5 = scmp.lt.u32.totalorder %s1059_s29, %s1571_s7 }
  0x44   : > { %p1062_p10 = pnand %p1060_p6, %p1322_p13 }
  0x46   : > { %p1063_p3 = pneg %p1062_p10 }
  0x48   : > { %p1068_p7 = pnand %p1066_p5, %p1063_p3 }
  0x4a   : > { %1071 = shalt.err (!%p1068_p7)
}
  0x4b   : > { %s1072_s16 = scalar_lea.vmem %s303_s24, 512  ;;  %p1080_p1 = scmp.lt.s32.totalorder %s303_s24, %s303_s24 }
  0x4c   : > { %p1073_p9 = scmp.ne.s32.totalorder %s303_s24, %s1072_s16  ;;  %p1081_p2 = scmp.lt.s32.totalorder %s1072_s16, %s1072_s16 }
  0x4e   : > { %p1075_p12 = pnand %p1073_p9, %p1322_p13  ;;  %p1082_p4 = por %p1081_p2, %p1080_p1 }
  0x50   : > { %p1076_p0 = pneg %p1075_p12 }
  0x52   : > { %p1083_p8 = pnand %p1082_p4, %p1076_p0 }
  0x54   : > { %1086 = shalt.err (!%p1083_p8)
}
  0x55   : > { %930 = dma.hbm_to_vmem [thread:$0]  (!%p1306_p11), %s1571_s7, 512, %s303_s24, [#allocation9], %s1196_s25, %s1196_s25, %s1197_s26  }
  0x56   : > { %s1393_s14 = sadd.s32 1, %s1191_s12   ;;  %s34_s30 = sadd.s32 1, %s1187_s11 }
  0x57   : > { %s31_s20 = ssub.s32 %s1191_s12, %s1393_s14  ;;  %p41_p8 = scmp.ne.s32.totalorder %s1187_s11, %s1183_s10 }
  0x58   : > { %p32_p4 = scmp.eq.s32.totalorder %s31_s20, 0  ;;  %p42_p13 = scmp.eq.s32.totalorder %s1191_s12, 0 }
  0x59   : > { %p942_p6 = scmp.lt.s32.totalorder %s1191_s12, 2  ;;  %p1588_p3 = scmp.eq.s32.totalorder %s1276_s13, 1 }
  0x5a   : > { %s1403_s27 = scalar_select %p32_p4, %s1187_s11, %s34_s30  }
  0x5b   : > { %p43_p10 = por %p42_p13, %p41_p8  ;;  %p1407_p5 = por %p1588_p3, %p41_p8 }
  0x5c   : > { %s319_s29 = sand.u32 1, %s1187_s11   ;;  %s834_s18 = sshll.u32 %s1191_s12, 6 }
  0x5d   : > { %s833_s24 = sshll.u32 %s319_s29, 2  ;;  %s1416_s21 = scalar_lea.hbm %s1564_s0, %s834_s18 }
  0x5e   : > { %s323_s23 = scalar_lea.vmem [#allocation2], %s833_s24  ;;  %p1418_p11 = pnand %p942_p6, %p43_p10 }
  0x5f   : > { %s330_s19 = sshll.u32 %s323_s23, 4  ;;  %s320_s22 = scalar_lea.sflag [#allocation3], %s319_s29  ;;  %s1422_s19 = int_to_ptr.vmem [resolvable:$true] %s330_s19 }
  0x60   : > { %s1087_s9 = scalar_lea.hbm %s1416_s21, 64  ;;  %p1089_p9 = pneg %p1418_p11 }
  0x61   : > { %p1088_p7 = scmp.ne.s32.totalorder %s1416_s21, %s1087_s9  ;;  %s1092_s18 = scalar_lea.hbm %s1564_s0, 128 }
  0x62   : > { %p1093_p1 = scmp.lt.u32.totalorder %s1416_s21, %s1564_s0  ;;  %p1094_p2 = scmp.lt.u32.totalorder %s1092_s18, %s1087_s9 }
  0x63   : > { %p1090_p12 = pnand %p1089_p9, %p1088_p7  ;;  %p1096_p8 = scmp.lt.u32.totalorder %s1087_s9, %s1416_s21 }
  0x64   : > { %p1095_p4 = por %p1094_p2, %p1093_p1 }
  0x65   : > { %p1091_p0 = pneg %p1090_p12 }
  0x66   : > { %p1097_p13 = por %p1096_p8, %p1095_p4 }
  0x68   : > { %p1098_p6 = pnand %p1097_p13, %p1091_p0 }
  0x6a   : > { %1101 = shalt.err (!%p1098_p6)
}
  0x6b   : > { %s1102_s29 = scalar_lea.vmem %s1422_s19, 64  ;;  %s1198_s26 = smov [#allocation2]  }
  0x6c   : > { %p1103_p10 = scmp.ne.s32.totalorder %s1422_s19, %s1102_s29  ;;  %s1107_s23 = sshll.u32 %s1198_s26, 4  ;;  %s1108_s23 = int_to_ptr.vmem [resolvable:$false] %s1107_s23 }
  0x6d   : > { %s1109_s20 = scalar_lea.vmem %s1108_s23, 128  ;;  %p1110_p12 = scmp.lt.s32.totalorder %s1422_s19, %s1108_s23 }
  0x6e   : > { %p1105_p3 = pnand %p1103_p10, %p1089_p9  ;;  %p1111_p1 = scmp.lt.s32.totalorder %s1109_s20, %s1102_s29 }
  0x70   : > { %p1106_p7 = pneg %p1105_p3  ;;  %p1112_p2 = por %p1111_p1, %p1110_p12 }
  0x72   : > { %p1113_p4 = pnand %p1112_p2, %p1106_p7 }
  0x74   : > { %1116 = shalt.err (!%p1113_p4)
}
  0x75   : > { %934 = dma.hbm_to_vmem [thread:$0]  (!%p1418_p11), %s1416_s21, 64, %s1422_s19, %s320_s22  }
  0x76   : > { %p1591_p0 = scmp.ne.s32.totalorder %s1585_s17, 0 }
  0x77   : > { %s1452_s9 = sand.u32 (!%p1591_p0), 1, %s1183_s10   ;;  %p1592_p9 = scmp.ne.s32.totalorder (!%p1591_p0), %s1582_s15, 0 }
  0x78   : > { %346 = sbr.rel (%p1591_p0) target bundleno = 1316 (0x524), region = 56  ;;  %s836_s30 = sshll.u32 (!%p1591_p0), %s1452_s9, 2 }
  0x79   : > { %s349_s18 = scalar_lea.sflag (!%p1591_p0), [#allocation3], %s1452_s9  ;;  %s352_s24 = scalar_lea.vmem (!%p1591_p0), [#allocation2], %s836_s30 }
  0x7f   : > { %1162 = dma.done.wait (%p1592_p9), %s349_s18, 64  }
  0x80   : > { %1164 = vsyncadd (%p1592_p9), %s349_s18, 4294967232  ;;  %p1593_p8 = scmp.eq.s32.totalorder %s1276_s13, 0 }
  0x82   : > { %1166 = dma.done.wait (%p1593_p8), [#allocation6], 144   ;;  %p1594_p11 = pmov %p1593_p8 }
  0x83   : > { %p1595_p13 = pmov %p1593_p8 }
  0x84   : > { %1168 = vsyncadd (%p1594_p11), [#allocation6], 4294967152 }
  0x85   : > { %1170 = dma.done.wait (%p1595_p13), [#allocation9], 512   ;;  %p1596_p6 = pmov %p1593_p8 }
  0x86   : > { %v1199_v0 = vmov 0.0   ;;  %vm1200_vm0 = vmmov 0   ;;  %v990_v1 = vld [vmem:[#allocation5] sm:$0xff]   ;;  %v408_v2 = vld [vmem:[%s352_s24] sm:$0xf]  ;;  %vm424_vm1 = vcmask 130048  }
  0x87   : > { %1172 = vsyncadd (%p1596_p6), [#allocation9], 4294966784  ;;  %875 = vmatprep.subr.bf16.mxu0 %v1199_v0  ;;  %877 = vmatprep.mubr.msk.bf16.mxu0 %vm1200_vm0, %v1199_v0  ;;  %v991_v3 = vld [vmem:[%s1568_s4] sm:$0xff]   ;;  %v992_v4 = vld [vmem:[%s1568_s4 + $0x8] sm:$0xff]   ;;  %p403_p10 = scmp.lt.s32.totalorder %s1276_s13, 1  ;;  %v1201_v8 = vmov 0  }
  0x88   : > { %881 = vmatprep.subr.bf16.mxu1 %v1199_v0  ;;  %889 = vmatprep.mubr.msk.bf16.mxu1 %vm1200_vm0, %v1199_v0  ;;  %v993_v5 = vld [vmem:[%s1568_s4 + $0x10] sm:$0xff]   ;;  %v994_v6 = vld [vmem:[%s1568_s4 + $0x18] sm:$0xff]   ;;  %vm509_vm3 = vcmask 523264   ;;  %v997_v20 = vld [vmem:[#allocation8 + $0x10] sm:$0xff]   ;;  %s1202_s29 = smov 16   ;;  %vm687_vm5 = vcmask 261248  }
  0x89   : > { %876 = vmatpush3.bf16.msra.mxu0 %v990_v1  ;;  %882 = vmatpush3.bf16.msra.mxu1 %v991_v3  ;;  %v995_v7 = vld [vmem:[#allocation8] sm:$0xff]   ;;  %s404_s26 = scalar_select %p403_p10, %s1276_s13, 1  ;;  %v996_v9 = vld [vmem:[#allocation8 + $0x8] sm:$0xff]   ;;  %v842_v12 = vld [vmem:[#allocation7] ss:$0 sm:$0xff]  ;;  %vm692_vm6 = vcmask 392448  }
  0x8a   : > { %893 = vmatprep.subr.bf16.mxu0 %v1199_v0  ;;  %883 = vmatprep.subr.bf16.mxu1 %v1199_v0  ;;  %v998_v21 = vld [vmem:[#allocation8 + $0x18] sm:$0xff]   ;;  %v845_v23 = vld [vmem:[%s1569_s5] ss:$0 sm:$0xff]  ;;  %v852_v25 = vld [vmem:[%s1570_s6 + $0x1] ss:$0 sm:$0xff]  ;;  %s860_s30 = sshll.u32 %s1276_s13, 7 }
  0x8b   : > { %989 = vset.pattern.permute.xlu0 %v1201_v8  ;;  %s841_s23 = sshll.u32 %s404_s26, 3  ;;  %v851_v24 = vld [vmem:[%s1570_s6] ss:$0 sm:$0xff]  ;;  %s1203_s26 = smov 112   ;;  %vm698_vm7 = vcmask 400768   ;;  %vm700_vm8 = vcmask 1047944  }
  0x8c   : > { %878 = vmatmul.mubr.msk.bf16.vlgmr.msra.gmra.mrb[0].mxu0 %vm424_vm1, %v408_v2  ;;  %s406_s18 = scalar_lea.vmem %s1565_s1, %s841_s23  ;;  %v853_v35 = vld [vmem:[%s1572_s8] ss:$0 sm:$0xff]  ;;  %s840_s23 = sshll.u32 %s1452_s9, 3 }
  0x8d   : > { %901 = vmatprep.mubr.msk.bf16.mxu0 %vm1200_vm0, %v1199_v0  ;;  %884 = vmatpush3.bf16.msra.mxu1 %v992_v4  ;;  %v554_v10 = vld [vmem:[%s406_s18] sm:$0xff]  ;;  %s402_s20 = scalar_lea.vmem [#allocation10], %s840_s23  ;;  %s1597_s17 = sld [smem:[#allocation17_spill]] }
  0x8e   : > { %885 = vmatprep.subr.bf16.mxu1 %v1199_v0  ;;  %894 = vmatpush3.bf16.msra.mxu0 %v995_v7  ;;  %vm560_vm2 = vcmp.eq.s32.totalorder %v554_v10, 1  ;;  %s716_s18 = sshll.u32 %s402_s20, 4  ;;  %s703_s19 = scalar_lea.sflag [#allocation4], %s1452_s9  ;;  %s1521_s18 = int_to_ptr.vmem [resolvable:$true] %s716_s18 }
  0x8f   : > { %895 = vmatprep.subr.bf16.mxu0 %v1199_v0  ;;  %v562_v11 = vsel %vm560_vm2, 1, %v1201_v8  ;;  %s1117_s16 = scalar_lea.vmem %s1521_s18, 128  ;;  %s1204_s13 = smov [#allocation10]  }
  0x90   : > { %564 = vperm.xlu0 %989, %v562_v11   ;;  %p1118_p3 = scmp.ne.s32.totalorder %s1521_s18, %s1117_s16  ;;  %s1121_s22 = sshll.u32 %s1204_s13, 4  ;;  %s1122_s22 = int_to_ptr.vmem [resolvable:$false] %s1121_s22 }
  0x91   : > { %886 = vmatpush3.bf16.msra.mxu1 %v993_v5  ;;  %s1123_s25 = scalar_lea.vmem %s1122_s22, 256  ;;  %p1124_p1 = scmp.lt.s32.totalorder %s1521_s18, %s1122_s22 }
  0x92   : > { %887 = vmatprep.subr.bf16.mxu1 %v1199_v0  ;;  %896 = vmatpush3.bf16.msra.mxu0 %v996_v9  ;;  %p1119_p7 = pnand %p1118_p3, %p1407_p5  ;;  %p1125_p2 = scmp.lt.s32.totalorder %s1123_s25, %s1117_s16 }
  0x93   : > { %897 = vmatprep.subr.bf16.mxu0 %v1199_v0  ;;  %s1519_s21 = scalar_lea.hbm %s1597_s17, %s860_s30 }
  0x94   : > { %p1120_p12 = pneg %p1119_p7  ;;  %p1126_p4 = por %p1125_p2, %p1124_p1 }
  0x95   : > { %888 = vmatpush3.bf16.msra.mxu1 %v994_v6 }
  0x96   : > { %898 = vmatpush3.bf16.msra.mxu0 %v997_v20  ;;  %p1127_p0 = pnand %p1126_p4, %p1120_p12 }
  0x97   : > { %899 = vmatprep.subr.bf16.mxu0 %v1199_v0 }
  0x9a   : > { %900 = vmatpush3.bf16.msra.mxu0 %v998_v21 }
 0x10f   : > { %v565_v22 = vpop.permute.xlu0 %564 }
 0x110   : > { %vm566_vm4 = vcmp.eq.s32.totalorder %v565_v22, 1 }
 0x111   : > { %v571_v29 = vsel %vm566_vm4, %v852_v25, %v851_v24 }
 0x15f   : > { %v462_v13 = vpop.f32.mrb[0].mxu0 }
 0x160   : > { %v463_v14 = vadd.f32 %v842_v12, %v462_v13  ;;  %v879_v15 = vpop.f32.mrb[1].mxu0 }
 0x161   : > { %v465_v16 = vpop.f32.mrb[2].mxu0 }
 0x162   : > { %v468_v17 = vmax.f32 %v463_v14, 0.0  ;;  %v880_v18 = vpop.f32.mrb[3].mxu0 }
 0x164   : > { %v469_v19 = vpack.c.bf16 %v468_v17, %v468_v17 }
 0x166   : > { %890 = vmatmul.mubr.msk.bf16.vlgmr.msra.gmra.mrb[0].mxu1 %vm509_vm3, %v469_v19 }
 0x239   : > { %v547_v26 = vpop.f32.mrb[0].mxu1 }
 0x23a   : > { %v548_v27 = vadd.f32 %v845_v23, %v547_v26  ;;  %v891_v28 = vpop.f32.mrb[1].mxu1 }
 0x23b   : > { %v550_v30 = vpop.f32.mrb[2].mxu1 }
 0x23c   : > { %v553_v31 = vmax.f32 %v548_v27, 0.0  ;;  %v892_v32 = vpop.f32.mrb[3].mxu1 }
 0x23e   : > { %v572_v33 = vadd.f32 %v571_v29, %v553_v31 }
 0x240   : > { %v573_v34 = vpack.c.bf16 %v572_v33, %v572_v33 }
 0x242   : > { %902 = vmatmul.mubr.msk.bf16.vlgmr.msra.gmra.mrb[4].mxu0 %vm509_vm3, %v573_v34 }
 0x315   : > { %v650_v36 = vpop.f32.mrb[4].mxu0 }
 0x316   : > { %v651_v37 = vadd.f32 %v853_v35, %v650_v36  ;;  %v903_v38 = vpop.f32.mrb[5].mxu0 }
 0x317   : > { %v653_v39 = vpop.f32.mrb[6].mxu0 }
 0x318   : > { %v658_v40 = vsub.f32 0.0, %v651_v37  ;;  %v904_v41 = vpop.f32.mrb[7].mxu0  ;;  %v656_v43 = vmul.f32 1.442695, %v651_v37  ;;  %v667_v46 = vmul.f32 %v651_v37, %v651_v37 }
 0x31a   : > { %v659_v42 = vmul.f32 1.442695, %v658_v40 }
 0x31c   : > { %999 = vpow2.f32 %v659_v42 }
 0x31d   : > { %1001 = vpow2.f32 %v656_v43 }
 0x326   : > { %v1000_v44 = vpop.eup %999 }
 0x327   : > { %669 = vrot.lane.b32.xlu0 %v1000_v44, %s1202_s29  ;;  %v1002_v45 = vpop.eup %1001  ;;  %v661_v49 = vsub.f32 0.0, %v1000_v44 }
 0x32b   : > { %663 = vrot.lane.b32.xlu0 %v651_v37, %s1203_s26 }
 0x32f   : > { %684 = vrot.lane.b32.xlu0 %v1002_v45, %s1202_s29 }
 0x333   : > { %689 = vrot.lane.b32.xlu0 %v651_v37, %s1202_s29 }
 0x399   : > { %v670_v47 = vpop.permute.xlu0 %669 }
 0x39a   : > { %v672_v48 = vmul.f32 %v670_v47, %v667_v46 }
 0x39c   : > { %674 = vrot.lane.b32.xlu1 %v672_v48, %s1203_s26 }
 0x39d   : > { %v664_v50 = vpop.permute.xlu0 %663 }
 0x39e   : > { %v666_v51 = vmul.f32 %v664_v50, %v661_v49 }
 0x3a0   : > { %682 = vst.msk [vmem:[%s402_s20] sm:$0xff] %vm424_vm1, %v666_v51 }
 0x3a1   : > { %v685_v52 = vpop.permute.xlu0 %684 }
 0x3a2   : > { %688 = vst.msk [vmem:[%s402_s20] sm:$0xff] %vm687_vm5, %v685_v52 }
 0x3a5   : > { %v690_v53 = vpop.permute.xlu0 %689 }
 0x3a6   : > { %693 = vst.msk [vmem:[%s402_s20] sm:$0xff] %vm692_vm6, %v690_v53 }
 0x40e   : > { %v675_v54 = vpop.permute.xlu1 %674 }
 0x40f   : > { %v677_v55 = vsel %vm424_vm1, %v675_v54, 0.0 }
 0x410   : > { %678 = vadd.xlane.f32.xlu1 %v677_v55 }
 0x49d   : > { %v679_v56 = vpop.xlane.xlu1 %678 }
 0x49e   : > { %v680_v57 = vmul.f32 0.5, %v679_v56 }
 0x4a0   : > { %v681_v58 = vsub.f32 %v651_v37, %v680_v57 }
 0x4a2   : > { %695 = vrot.lane.b32.xlu0 %v681_v58, %s1202_s29 }
 0x514   : > { %v696_v59 = vpop.permute.xlu0 %695 }
 0x515   : > { %699 = vst.msk [vmem:[%s402_s20] sm:$0xff] %vm698_vm7, %v696_v59 }
 0x516   : > { %701 = vst.msk [vmem:[%s402_s20] sm:$0xff] %vm700_vm8, %v1199_v0 }
 0x517   : > { %1130 = shalt.err (!%p1127_p0)
}
 0x518   : > { %s1131_s9 = scalar_lea.hbm %s1519_s21, 128  ;;  %s1135_s23 = scalar_lea.hbm %s1597_s17, 256 }
 0x519   : > { %p1132_p9 = scmp.ne.s32.totalorder %s1519_s21, %s1131_s9  ;;  %p1136_p13 = scmp.lt.u32.totalorder %s1519_s21, %s1597_s17 }
 0x51a   : > { %p1137_p6 = scmp.lt.u32.totalorder %s1135_s23, %s1131_s9  ;;  %p1139_p3 = scmp.lt.u32.totalorder %s1131_s9, %s1519_s21 }
 0x51b   : > { %p1133_p8 = pnand %p1132_p9, %p1407_p5 }
 0x51c   : > { %p1138_p10 = por %p1137_p6, %p1136_p13 }
 0x51d   : > { %p1134_p11 = pneg %p1133_p8 }
 0x51e   : > { %p1140_p7 = por %p1139_p3, %p1138_p10 }
 0x520   : > { %p1141_p12 = pnand %p1140_p7, %p1134_p11 }
 0x522   : > { %1144 = shalt.err (!%p1141_p12)
}
 0x523   : > { %919 = dma.vmem_to_hbm [thread:$0]  (%p1407_p5), %s1521_s18, 128, %s1519_s21, %s703_s19  }
 0x524 PF: > { %s1598_s24 = sld [smem:[#allocation15_spill]]  ;;  %s1599_s15 = sld [smem:[#allocation16_spill]] }
 0x525   : > { %p1601_p2 = scmp.ge.s32.totalorder %s1191_s12, 2 }
 0x52a   : > { %s728_s16 = sand.u32 1, %s1598_s24   ;;  %p1600_p1 = scmp.ne.s32.totalorder %s1599_s15, 0 }
 0x52b   : > { %s729_s13 = scalar_lea.sflag [#allocation4], %s728_s16 }
 0x52c   : > { %p936_p4 = pnand %p1601_p2, %p1600_p1 }
 0x52e   : > { %1174 = dma.done.wait (!%p936_p4), %s729_s13, 128  }
 0x52f   : > { %1176 = vsyncadd (!%p936_p4), %s729_s13, 4294967168  ;;  %p24_p0 = scmp.ge.s32.totalorder %s1393_s14, 4   ;;  %s1602_s30 = smov %s1183_s10 }
 0x530   : > { %s1603_s10 = smov %s1187_s11  ;;  %s1604_s11 = smov %s1403_s27 }
 0x531   : > { %s1605_s12 = smov %s1393_s14  ;;  %26 = sbr.rel (!%p24_p0) target bundleno = 9 (0x9), region = 116 }
 0x538   :  { %734 = vsyncpa [#allocation3], 1 }
 0x539   :  { %736 = vsyncpa [#allocation3 + $0x1], 1 }
 0x53a   :  { %737 = vsyncpa [#allocation6], 1 }
 0x53b   :  { %738 = vsyncpa [#allocation9], 1 }
 0x53c   :  { %739 = vsyncpa [#allocation4], 1 }
 0x53d   :  { %741 = vsyncpa [#allocation4 + $0x1], 1 }

</bundles_post_ra>
